<compile_context>
chip_gen: v7x
topology: tpu7x:2x2x1
jax: 0.10.0
libtpu: 0.0.40
codegen_flags: <defaults>
</compile_context>

<pallas_src>
import jax
import jax.numpy as jnp
import numpy as np
from jax.experimental import pallas as pl
from jax.experimental.pallas import tpu as pltpu

_BN_EPS = 1e-5
_C = 16            # every layer padded to 16 channels (zero weights / scale / bias)
_TAPS = 3
_B_TILE_MAX = 32   # batch elements packed along the lane axis per grid step


def encoder_kernel(x_ref, w_ref, scale_ref, bias_ref, mask_l_ref, mask_r_ref, o_ref):
    """Fused 6x [Conv1d(k3,s1,p1) + BN(eval) + ReLU + MaxPool(2,2)] for one batch tile.

    x_ref:      (16, W0)     lane-packed input (B_TILE length-L0 batch segments on lanes)
    w_ref:      (6, 16, 48)  per-layer conv weights, K = 3 taps x 16 in-channels
    scale_ref:  (6, 16, 1)   folded BN scale (per out-channel)
    bias_ref:   (6, 16, 1)   folded BN shift + conv bias
    mask_l_ref: (1, W0)      0 at each segment's first valid column (left-tap 'same' pad)
    mask_r_ref: (6, 1, W0)   0 at each segment's last valid column per layer (right tap)
    o_ref:      (16, W0)     last-layer activation; valid samples at lane stride 64
    """
    num_layers = w_ref.shape[0]
    w0 = x_ref.shape[-1]
    act = x_ref[...]                                          # (16, W0) f32, lane-dense
    # Hoist the sublane broadcast of the shared left mask (reused by all 6 layers).
    ml = jnp.broadcast_to(mask_l_ref[...], (x_ref.shape[0], w0))

    for layer in range(num_layers):                           # unrolled; all shapes static
        d = 1 << layer                                        # dilation of this layer
        w = w_ref[layer]                                      # (16, 48)
        sc = scale_ref[layer]                                 # (16, 1)
        bi = bias_ref[layer]                                  # (16, 1)
        mr = mask_r_ref[layer]                                # (1, W0)

        # k=3 'same' conv taps via XLU lane rotations; boundary taps masked to zero.
        # pltpu.roll follows np.roll: roll(x, s)[i] = x[i - s].
        left = pltpu.roll(act, d, axis=1) * ml                # act[col - d], 0 at seg start
        right = pltpu.roll(act, w0 - d, axis=1) * mr          # act[col + d], 0 at seg end
        xk = jnp.concatenate([left, act, right], axis=0)      # (48, W0) im2col
        y = jnp.dot(w, xk, preferred_element_type=jnp.float32)  # (16, W0) single MXU matmul
        z = jnp.maximum(y * sc + bi, 0.0)                     # folded BN + ReLU

        # MaxPool1d(2, 2): pairwise max with the next valid sample (lane distance d).
        # No mask needed: wrapped lanes only land on columns that are never read again.
        act = jnp.maximum(z, pltpu.roll(z, w0 - d, axis=1))

    o_ref[...] = act


@jax.jit
def encoder_forward(x_ncl, w_all, scale_all, bias_all):
    """x_ncl: (N, 1, L) PyTorch NCL -> (N, 16, L // 64) NCL (eval-mode BatchNorm)."""
    n, c_in, l = x_ncl.shape
    num_layers = w_all.shape[0]
    pool = 2 ** num_layers                       # total downsampling (64)
    assert l % pool == 0, "sequence length must be divisible by 2**num_layers"
    l_out = l // pool

    b_tile = min(_B_TILE_MAX, n)                 # batch elements per grid step (on lanes)
    g = (n + b_tile - 1) // b_tile
    n_pad = g * b_tile
    w0 = b_tile * l

    # Channel-pad to 16 and lane-pack the batch: (G, B, 16, L) -> (G, 16, B*L).
    x = jnp.pad(x_ncl.astype(jnp.float32),
                ((0, n_pad - n), (0, _C - c_in), (0, 0)))
    xp = jnp.transpose(x.reshape(g, b_tile, _C, l), (0, 2, 1, 3)).reshape(g, _C, w0)

    # Precomputed {0,1} boundary masks (trace-time constants; no in-kernel iota).
    col = np.arange(w0) % l
    mask_l = (col != 0).astype(np.float32).reshape(1, w0)
    mask_r = np.stack(
        [(col != l - (1 << li)).astype(np.float32) for li in range(num_layers)]
    ).reshape(num_layers, 1, w0)

    # v7x: shard batch tiles across both TensorCores when there is >1 grid step.
    dim_sem = (pltpu.CORE_PARALLEL,) if g > 1 else ("arbitrary",)

    out_full = pl.pallas_call(
        encoder_kernel,
        out_shape=jax.ShapeDtypeStruct((g, _C, w0), jnp.float32),
        grid_spec=pltpu.PrefetchScalarGridSpec(
            num_scalar_prefetch=0,
            grid=(g,),
            in_specs=[
                pl.BlockSpec((None, _C, w0), lambda i: (i, 0, 0)),
                pl.BlockSpec((num_layers, _C, _TAPS * _C), lambda i: (0, 0, 0)),
                pl.BlockSpec((num_layers, _C, 1), lambda i: (0, 0, 0)),
                pl.BlockSpec((num_layers, _C, 1), lambda i: (0, 0, 0)),
                pl.BlockSpec((1, w0), lambda i: (0, 0)),
                pl.BlockSpec((num_layers, 1, w0), lambda i: (0, 0, 0)),
            ],
            out_specs=pl.BlockSpec((None, _C, w0), lambda i: (i, 0, 0)),
        ),
        compiler_params=pltpu.CompilerParams(dimension_semantics=dim_sem),
    )(xp, w_all, scale_all, bias_all, jnp.asarray(mask_l), jnp.asarray(mask_r))

    # Valid samples sit at lane stride `pool` inside each length-L segment.
    out = out_full.reshape(g, _C, b_tile, l_out, pool)[..., 0]     # (G, 16, B, l_out)
    out = jnp.transpose(out, (0, 2, 1, 3)).reshape(n_pad, _C, l_out)
    return out[:n]


def make_params(key):
    """Deterministic synthetic Conv+BN params: returns (raw list, packed kernel arrays)."""
    channels = [(1, 8), (8, 16), (16, 16), (16, 16), (16, 16), (16, 16)]
    raw, w_blocks, s_blocks, b_blocks = [], [], [], []
    for i, (c_in, c_out) in enumerate(channels):
        k = jax.random.fold_in(key, i)
        kw, kb, kg, kbe, km, kv = jax.random.split(k, 6)
        w = 0.1 * jax.random.normal(kw, (c_out, c_in, 3), jnp.float32)   # torch layout
        b = 0.1 * jax.random.normal(kb, (c_out,), jnp.float32)
        gamma = 1.0 + 0.1 * jax.random.normal(kg, (c_out,), jnp.float32)
        beta = 0.1 * jax.random.normal(kbe, (c_out,), jnp.float32)
        mean = 0.1 * jax.random.normal(km, (c_out,), jnp.float32)
        var = 1.0 + 0.1 * jax.random.uniform(kv, (c_out,), jnp.float32)
        raw.append((w, b, gamma, beta, mean, var))

        # Fold eval-mode BN + conv bias:  y = scale * conv_nobias(x) + bias.
        scale = gamma / jnp.sqrt(var + _BN_EPS)
        bias = scale * (b - mean) + beta

        # (C_out, C_in, 3) -> (16, 48) with column = 16*tap + in_channel, zero-padded so
        # every layer shares one uniform (16, 48) weight block.
        wk = jnp.transpose(w, (0, 2, 1))                                  # (c_out, 3, c_in)
        wk = jnp.pad(wk, ((0, _C - c_out), (0, 0), (0, _C - c_in)))
        w_blocks.append(wk.reshape(_C, _TAPS * _C))
        s_blocks.append(jnp.pad(scale, (0, _C - c_out)).reshape(_C, 1))
        b_blocks.append(jnp.pad(bias, (0, _C - c_out)).reshape(_C, 1))

    return raw, (jnp.stack(w_blocks), jnp.stack(s_blocks), jnp.stack(b_blocks))


def encoder_reference(x_ncl, raw_params):
    """Pure-JAX reference of the PyTorch forward (eval-mode BN)."""
    x = x_ncl.astype(jnp.float32)
    for (w, b, gamma, beta, mean, var) in raw_params:
        n, c, l = x.shape
        xp = jnp.pad(x, ((0, 0), (0, 0), (1, 1)))
        cols = jnp.stack([xp[:, :, k:k + l] for k in range(3)], axis=-1)  # (N, C_in, L, 3)
        y = jnp.einsum('ncls,ocs->nol', cols, w,
                       precision=jax.lax.Precision.HIGHEST) + b[None, :, None]
        y = (y - mean[None, :, None]) / jnp.sqrt(var[None, :, None] + _BN_EPS)
        y = y * gamma[None, :, None] + beta[None, :, None]
        y = jnp.maximum(y, 0.0)
        n, co, l = y.shape
        x = jnp.max(y.reshape(n, co, l // 2, 2), axis=-1)                 # MaxPool1d(2,2)
    return x


if __name__ == "__main__":
    key = jax.random.PRNGKey(0)
    raw_params, (w_all, scale_all, bias_all) = make_params(jax.random.fold_in(key, 1))
    # Input matches nn.Conv1d(1, 8, ...) expectations: (N, C=1, L).
    x = jax.random.normal(jax.random.fold_in(key, 2), (2, 1, 256), jnp.float32)

    out = encoder_forward(x, w_all, scale_all, bias_all)
    out = jax.block_until_ready(out)
    assert out.shape == (2, 16, 4), out.shape
    assert out.dtype == jnp.float32

    ref = encoder_reference(x, raw_params)
    np.testing.assert_allclose(np.asarray(out), np.asarray(ref), rtol=5e-2, atol=5e-4)
    print("KERNEL_OK")
</pallas_src>

<mosaic_0001>
module attributes {stable_mosaic.version = 11 : i64} {
  func.func @encoder_kernel(%arg0: i32, %arg1: memref<1x16x512xf32, #tpu.memory_space<vmem>>, %arg2: memref<6x16x48xf32, #tpu.memory_space<vmem>>, %arg3: memref<6x16x1xf32, #tpu.memory_space<vmem>>, %arg4: memref<6x16x1xf32, #tpu.memory_space<vmem>>, %arg5: memref<1x512xf32, #tpu.memory_space<vmem>>, %arg6: memref<6x1x512xf32, #tpu.memory_space<vmem>>, %arg7: memref<1x16x512xf32, #tpu.memory_space<vmem>>) attributes {dimension_semantics = [#tpu.dimension_semantics<arbitrary>], iteration_bounds = array<i64: 1>, scalar_prefetch = 0 : i64, scratch_operands = 0 : i64, tpu.core_type = #tpu.core_type<tc>, window_params = [{transform_indices = @transform_0, window_bounds = array<i64: 1, 16, 512>}, {pipeline_mode = #tpu.pipeline_mode<synchronous>, transform_indices = @transform_1, window_bounds = array<i64: 6, 16, 48>}, {pipeline_mode = #tpu.pipeline_mode<synchronous>, transform_indices = @transform_2, window_bounds = array<i64: 6, 16, 1>}, {pipeline_mode = #tpu.pipeline_mode<synchronous>, transform_indices = @transform_3, window_bounds = array<i64: 6, 16, 1>}, {pipeline_mode = #tpu.pipeline_mode<synchronous>, transform_indices = @transform_4, window_bounds = array<i64: 1, 512>}, {pipeline_mode = #tpu.pipeline_mode<synchronous>, transform_indices = @transform_5, window_bounds = array<i64: 6, 1, 512>}, {transform_indices = @transform_6, window_bounds = array<i64: 1, 16, 512>}]} {
    %c0 = arith.constant 0 : index
    %c0_0 = arith.constant 0 : index
    %c0_1 = arith.constant 0 : index
    %0 = vector.load %arg1[%c0, %c0_0, %c0_1] : memref<1x16x512xf32, #tpu.memory_space<vmem>>, vector<1x16x512xf32>
    %1 = vector.shape_cast %0 : vector<1x16x512xf32> to vector<16x512xf32>
    %c0_2 = arith.constant 0 : index
    %c0_3 = arith.constant 0 : index
    %2 = vector.load %arg5[%c0_2, %c0_3] : memref<1x512xf32, #tpu.memory_space<vmem>>, vector<1x512xf32>
    %3 = vector.shape_cast %2 : vector<1x512xf32> to vector<1x512xf32>
    %4 = vector.broadcast %3 : vector<1x512xf32> to vector<16x512xf32>
    %c0_4 = arith.constant 0 : index
    %c0_5 = arith.constant 0 : index
    %c0_6 = arith.constant 0 : index
    %5 = vector.load %arg2[%c0_4, %c0_5, %c0_6] : memref<6x16x48xf32, #tpu.memory_space<vmem>>, vector<1x16x48xf32>
    %6 = vector.shape_cast %5 : vector<1x16x48xf32> to vector<16x48xf32>
    %c0_7 = arith.constant 0 : index
    %c0_8 = arith.constant 0 : index
    %c0_9 = arith.constant 0 : index
    %7 = vector.load %arg3[%c0_7, %c0_8, %c0_9] : memref<6x16x1xf32, #tpu.memory_space<vmem>>, vector<1x16x1xf32>
    %8 = vector.shape_cast %7 : vector<1x16x1xf32> to vector<16x1xf32>
    %c0_10 = arith.constant 0 : index
    %c0_11 = arith.constant 0 : index
    %c0_12 = arith.constant 0 : index
    %9 = vector.load %arg4[%c0_10, %c0_11, %c0_12] : memref<6x16x1xf32, #tpu.memory_space<vmem>>, vector<1x16x1xf32>
    %10 = vector.shape_cast %9 : vector<1x16x1xf32> to vector<16x1xf32>
    %c0_13 = arith.constant 0 : index
    %c0_14 = arith.constant 0 : index
    %c0_15 = arith.constant 0 : index
    %11 = vector.load %arg6[%c0_13, %c0_14, %c0_15] : memref<6x1x512xf32, #tpu.memory_space<vmem>>, vector<1x1x512xf32>
    %12 = vector.shape_cast %11 : vector<1x1x512xf32> to vector<1x512xf32>
    %c1_i32 = arith.constant 1 : i32
    %13 = tpu.dynamic_rotate %1 by %c1_i32 dim 1 : vector<16x512xf32>, i32 -> vector<16x512xf32>
    %14 = arith.mulf %13, %4 : vector<16x512xf32>
    %c511_i32 = arith.constant 511 : i32
    %15 = tpu.dynamic_rotate %1 by %c511_i32 dim 1 : vector<16x512xf32>, i32 -> vector<16x512xf32>
    %16 = vector.broadcast %12 : vector<1x512xf32> to vector<16x512xf32>
    %17 = arith.mulf %15, %16 : vector<16x512xf32>
    %18 = tpu.concatenate %14, %1, %17 in 0 : vector<16x512xf32>, vector<16x512xf32>, vector<16x512xf32> -> vector<48x512xf32>
    %cst = arith.constant dense<0.000000e+00> : vector<16x512xf32>
    %19 = tpu.matmul %6, %18, %cst {dimension_numbers = #tpu.dot_dimension_numbers<[1], [0], [0], [1], [0, 0, 1, 1], [], []>} : vector<16x48xf32>, vector<48x512xf32>, vector<16x512xf32> -> vector<16x512xf32>
    %20 = vector.broadcast %8 : vector<16x1xf32> to vector<16x512xf32>
    %21 = arith.mulf %19, %20 : vector<16x512xf32>
    %22 = vector.broadcast %10 : vector<16x1xf32> to vector<16x512xf32>
    %23 = arith.addf %21, %22 : vector<16x512xf32>
    %cst_16 = arith.constant 0.000000e+00 : f32
    %24 = vector.broadcast %cst_16 : f32 to vector<16x512xf32>
    %25 = arith.maximumf %23, %24 : vector<16x512xf32>
    %c511_i32_17 = arith.constant 511 : i32
    %26 = tpu.dynamic_rotate %25 by %c511_i32_17 dim 1 : vector<16x512xf32>, i32 -> vector<16x512xf32>
    %27 = arith.maximumf %25, %26 : vector<16x512xf32>
    %c1 = arith.constant 1 : index
    %c0_18 = arith.constant 0 : index
    %c0_19 = arith.constant 0 : index
    %28 = vector.load %arg2[%c1, %c0_18, %c0_19] : memref<6x16x48xf32, #tpu.memory_space<vmem>>, vector<1x16x48xf32>
    %29 = vector.shape_cast %28 : vector<1x16x48xf32> to vector<16x48xf32>
    %c1_20 = arith.constant 1 : index
    %c0_21 = arith.constant 0 : index
    %c0_22 = arith.constant 0 : index
    %30 = vector.load %arg3[%c1_20, %c0_21, %c0_22] : memref<6x16x1xf32, #tpu.memory_space<vmem>>, vector<1x16x1xf32>
    %31 = vector.shape_cast %30 : vector<1x16x1xf32> to vector<16x1xf32>
    %c1_23 = arith.constant 1 : index
    %c0_24 = arith.constant 0 : index
    %c0_25 = arith.constant 0 : index
    %32 = vector.load %arg4[%c1_23, %c0_24, %c0_25] : memref<6x16x1xf32, #tpu.memory_space<vmem>>, vector<1x16x1xf32>
    %33 = vector.shape_cast %32 : vector<1x16x1xf32> to vector<16x1xf32>
    %c1_26 = arith.constant 1 : index
    %c0_27 = arith.constant 0 : index
    %c0_28 = arith.constant 0 : index
    %34 = vector.load %arg6[%c1_26, %c0_27, %c0_28] : memref<6x1x512xf32, #tpu.memory_space<vmem>>, vector<1x1x512xf32>
    %35 = vector.shape_cast %34 : vector<1x1x512xf32> to vector<1x512xf32>
    %c2_i32 = arith.constant 2 : i32
    %36 = tpu.dynamic_rotate %27 by %c2_i32 dim 1 : vector<16x512xf32>, i32 -> vector<16x512xf32>
    %37 = arith.mulf %36, %4 : vector<16x512xf32>
    %c510_i32 = arith.constant 510 : i32
    %38 = tpu.dynamic_rotate %27 by %c510_i32 dim 1 : vector<16x512xf32>, i32 -> vector<16x512xf32>
    %39 = vector.broadcast %35 : vector<1x512xf32> to vector<16x512xf32>
    %40 = arith.mulf %38, %39 : vector<16x512xf32>
    %41 = tpu.concatenate %37, %27, %40 in 0 : vector<16x512xf32>, vector<16x512xf32>, vector<16x512xf32> -> vector<48x512xf32>
    %cst_29 = arith.constant dense<0.000000e+00> : vector<16x512xf32>
    %42 = tpu.matmul %29, %41, %cst_29 {dimension_numbers = #tpu.dot_dimension_numbers<[1], [0], [0], [1], [0, 0, 1, 1], [], []>} : vector<16x48xf32>, vector<48x512xf32>, vector<16x512xf32> -> vector<16x512xf32>
    %43 = vector.broadcast %31 : vector<16x1xf32> to vector<16x512xf32>
    %44 = arith.mulf %42, %43 : vector<16x512xf32>
    %45 = vector.broadcast %33 : vector<16x1xf32> to vector<16x512xf32>
    %46 = arith.addf %44, %45 : vector<16x512xf32>
    %cst_30 = arith.constant 0.000000e+00 : f32
    %47 = vector.broadcast %cst_30 : f32 to vector<16x512xf32>
    %48 = arith.maximumf %46, %47 : vector<16x512xf32>
    %c510_i32_31 = arith.constant 510 : i32
    %49 = tpu.dynamic_rotate %48 by %c510_i32_31 dim 1 : vector<16x512xf32>, i32 -> vector<16x512xf32>
    %50 = arith.maximumf %48, %49 : vector<16x512xf32>
    %c2 = arith.constant 2 : index
    %c0_32 = arith.constant 0 : index
    %c0_33 = arith.constant 0 : index
    %51 = vector.load %arg2[%c2, %c0_32, %c0_33] : memref<6x16x48xf32, #tpu.memory_space<vmem>>, vector<1x16x48xf32>
    %52 = vector.shape_cast %51 : vector<1x16x48xf32> to vector<16x48xf32>
    %c2_34 = arith.constant 2 : index
    %c0_35 = arith.constant 0 : index
    %c0_36 = arith.constant 0 : index
    %53 = vector.load %arg3[%c2_34, %c0_35, %c0_36] : memref<6x16x1xf32, #tpu.memory_space<vmem>>, vector<1x16x1xf32>
    %54 = vector.shape_cast %53 : vector<1x16x1xf32> to vector<16x1xf32>
    %c2_37 = arith.constant 2 : index
    %c0_38 = arith.constant 0 : index
    %c0_39 = arith.constant 0 : index
    %55 = vector.load %arg4[%c2_37, %c0_38, %c0_39] : memref<6x16x1xf32, #tpu.memory_space<vmem>>, vector<1x16x1xf32>
    %56 = vector.shape_cast %55 : vector<1x16x1xf32> to vector<16x1xf32>
    %c2_40 = arith.constant 2 : index
    %c0_41 = arith.constant 0 : index
    %c0_42 = arith.constant 0 : index
    %57 = vector.load %arg6[%c2_40, %c0_41, %c0_42] : memref<6x1x512xf32, #tpu.memory_space<vmem>>, vector<1x1x512xf32>
    %58 = vector.shape_cast %57 : vector<1x1x512xf32> to vector<1x512xf32>
    %c4_i32 = arith.constant 4 : i32
    %59 = tpu.dynamic_rotate %50 by %c4_i32 dim 1 : vector<16x512xf32>, i32 -> vector<16x512xf32>
    %60 = arith.mulf %59, %4 : vector<16x512xf32>
    %c508_i32 = arith.constant 508 : i32
    %61 = tpu.dynamic_rotate %50 by %c508_i32 dim 1 : vector<16x512xf32>, i32 -> vector<16x512xf32>
    %62 = vector.broadcast %58 : vector<1x512xf32> to vector<16x512xf32>
    %63 = arith.mulf %61, %62 : vector<16x512xf32>
    %64 = tpu.concatenate %60, %50, %63 in 0 : vector<16x512xf32>, vector<16x512xf32>, vector<16x512xf32> -> vector<48x512xf32>
    %cst_43 = arith.constant dense<0.000000e+00> : vector<16x512xf32>
    %65 = tpu.matmul %52, %64, %cst_43 {dimension_numbers = #tpu.dot_dimension_numbers<[1], [0], [0], [1], [0, 0, 1, 1], [], []>} : vector<16x48xf32>, vector<48x512xf32>, vector<16x512xf32> -> vector<16x512xf32>
    %66 = vector.broadcast %54 : vector<16x1xf32> to vector<16x512xf32>
    %67 = arith.mulf %65, %66 : vector<16x512xf32>
    %68 = vector.broadcast %56 : vector<16x1xf32> to vector<16x512xf32>
    %69 = arith.addf %67, %68 : vector<16x512xf32>
    %cst_44 = arith.constant 0.000000e+00 : f32
    %70 = vector.broadcast %cst_44 : f32 to vector<16x512xf32>
    %71 = arith.maximumf %69, %70 : vector<16x512xf32>
    %c508_i32_45 = arith.constant 508 : i32
    %72 = tpu.dynamic_rotate %71 by %c508_i32_45 dim 1 : vector<16x512xf32>, i32 -> vector<16x512xf32>
    %73 = arith.maximumf %71, %72 : vector<16x512xf32>
    %c3 = arith.constant 3 : index
    %c0_46 = arith.constant 0 : index
    %c0_47 = arith.constant 0 : index
    %74 = vector.load %arg2[%c3, %c0_46, %c0_47] : memref<6x16x48xf32, #tpu.memory_space<vmem>>, vector<1x16x48xf32>
    %75 = vector.shape_cast %74 : vector<1x16x48xf32> to vector<16x48xf32>
    %c3_48 = arith.constant 3 : index
    %c0_49 = arith.constant 0 : index
    %c0_50 = arith.constant 0 : index
    %76 = vector.load %arg3[%c3_48, %c0_49, %c0_50] : memref<6x16x1xf32, #tpu.memory_space<vmem>>, vector<1x16x1xf32>
    %77 = vector.shape_cast %76 : vector<1x16x1xf32> to vector<16x1xf32>
    %c3_51 = arith.constant 3 : index
    %c0_52 = arith.constant 0 : index
    %c0_53 = arith.constant 0 : index
    %78 = vector.load %arg4[%c3_51, %c0_52, %c0_53] : memref<6x16x1xf32, #tpu.memory_space<vmem>>, vector<1x16x1xf32>
    %79 = vector.shape_cast %78 : vector<1x16x1xf32> to vector<16x1xf32>
    %c3_54 = arith.constant 3 : index
    %c0_55 = arith.constant 0 : index
    %c0_56 = arith.constant 0 : index
    %80 = vector.load %arg6[%c3_54, %c0_55, %c0_56] : memref<6x1x512xf32, #tpu.memory_space<vmem>>, vector<1x1x512xf32>
    %81 = vector.shape_cast %80 : vector<1x1x512xf32> to vector<1x512xf32>
    %c8_i32 = arith.constant 8 : i32
    %82 = tpu.dynamic_rotate %73 by %c8_i32 dim 1 : vector<16x512xf32>, i32 -> vector<16x512xf32>
    %83 = arith.mulf %82, %4 : vector<16x512xf32>
    %c504_i32 = arith.constant 504 : i32
    %84 = tpu.dynamic_rotate %73 by %c504_i32 dim 1 : vector<16x512xf32>, i32 -> vector<16x512xf32>
    %85 = vector.broadcast %81 : vector<1x512xf32> to vector<16x512xf32>
    %86 = arith.mulf %84, %85 : vector<16x512xf32>
    %87 = tpu.concatenate %83, %73, %86 in 0 : vector<16x512xf32>, vector<16x512xf32>, vector<16x512xf32> -> vector<48x512xf32>
    %cst_57 = arith.constant dense<0.000000e+00> : vector<16x512xf32>
    %88 = tpu.matmul %75, %87, %cst_57 {dimension_numbers = #tpu.dot_dimension_numbers<[1], [0], [0], [1], [0, 0, 1, 1], [], []>} : vector<16x48xf32>, vector<48x512xf32>, vector<16x512xf32> -> vector<16x512xf32>
    %89 = vector.broadcast %77 : vector<16x1xf32> to vector<16x512xf32>
    %90 = arith.mulf %88, %89 : vector<16x512xf32>
    %91 = vector.broadcast %79 : vector<16x1xf32> to vector<16x512xf32>
    %92 = arith.addf %90, %91 : vector<16x512xf32>
    %cst_58 = arith.constant 0.000000e+00 : f32
    %93 = vector.broadcast %cst_58 : f32 to vector<16x512xf32>
    %94 = arith.maximumf %92, %93 : vector<16x512xf32>
    %c504_i32_59 = arith.constant 504 : i32
    %95 = tpu.dynamic_rotate %94 by %c504_i32_59 dim 1 : vector<16x512xf32>, i32 -> vector<16x512xf32>
    %96 = arith.maximumf %94, %95 : vector<16x512xf32>
    %c4 = arith.constant 4 : index
    %c0_60 = arith.constant 0 : index
    %c0_61 = arith.constant 0 : index
    %97 = vector.load %arg2[%c4, %c0_60, %c0_61] : memref<6x16x48xf32, #tpu.memory_space<vmem>>, vector<1x16x48xf32>
    %98 = vector.shape_cast %97 : vector<1x16x48xf32> to vector<16x48xf32>
    %c4_62 = arith.constant 4 : index
    %c0_63 = arith.constant 0 : index
    %c0_64 = arith.constant 0 : index
    %99 = vector.load %arg3[%c4_62, %c0_63, %c0_64] : memref<6x16x1xf32, #tpu.memory_space<vmem>>, vector<1x16x1xf32>
    %100 = vector.shape_cast %99 : vector<1x16x1xf32> to vector<16x1xf32>
    %c4_65 = arith.constant 4 : index
    %c0_66 = arith.constant 0 : index
    %c0_67 = arith.constant 0 : index
    %101 = vector.load %arg4[%c4_65, %c0_66, %c0_67] : memref<6x16x1xf32, #tpu.memory_space<vmem>>, vector<1x16x1xf32>
    %102 = vector.shape_cast %101 : vector<1x16x1xf32> to vector<16x1xf32>
    %c4_68 = arith.constant 4 : index
    %c0_69 = arith.constant 0 : index
    %c0_70 = arith.constant 0 : index
    %103 = vector.load %arg6[%c4_68, %c0_69, %c0_70] : memref<6x1x512xf32, #tpu.memory_space<vmem>>, vector<1x1x512xf32>
    %104 = vector.shape_cast %103 : vector<1x1x512xf32> to vector<1x512xf32>
    %c16_i32 = arith.constant 16 : i32
    %105 = tpu.dynamic_rotate %96 by %c16_i32 dim 1 : vector<16x512xf32>, i32 -> vector<16x512xf32>
    %106 = arith.mulf %105, %4 : vector<16x512xf32>
    %c496_i32 = arith.constant 496 : i32
    %107 = tpu.dynamic_rotate %96 by %c496_i32 dim 1 : vector<16x512xf32>, i32 -> vector<16x512xf32>
    %108 = vector.broadcast %104 : vector<1x512xf32> to vector<16x512xf32>
    %109 = arith.mulf %107, %108 : vector<16x512xf32>
    %110 = tpu.concatenate %106, %96, %109 in 0 : vector<16x512xf32>, vector<16x512xf32>, vector<16x512xf32> -> vector<48x512xf32>
    %cst_71 = arith.constant dense<0.000000e+00> : vector<16x512xf32>
    %111 = tpu.matmul %98, %110, %cst_71 {dimension_numbers = #tpu.dot_dimension_numbers<[1], [0], [0], [1], [0, 0, 1, 1], [], []>} : vector<16x48xf32>, vector<48x512xf32>, vector<16x512xf32> -> vector<16x512xf32>
    %112 = vector.broadcast %100 : vector<16x1xf32> to vector<16x512xf32>
    %113 = arith.mulf %111, %112 : vector<16x512xf32>
    %114 = vector.broadcast %102 : vector<16x1xf32> to vector<16x512xf32>
    %115 = arith.addf %113, %114 : vector<16x512xf32>
    %cst_72 = arith.constant 0.000000e+00 : f32
    %116 = vector.broadcast %cst_72 : f32 to vector<16x512xf32>
    %117 = arith.maximumf %115, %116 : vector<16x512xf32>
    %c496_i32_73 = arith.constant 496 : i32
    %118 = tpu.dynamic_rotate %117 by %c496_i32_73 dim 1 : vector<16x512xf32>, i32 -> vector<16x512xf32>
    %119 = arith.maximumf %117, %118 : vector<16x512xf32>
    %c5 = arith.constant 5 : index
    %c0_74 = arith.constant 0 : index
    %c0_75 = arith.constant 0 : index
    %120 = vector.load %arg2[%c5, %c0_74, %c0_75] : memref<6x16x48xf32, #tpu.memory_space<vmem>>, vector<1x16x48xf32>
    %121 = vector.shape_cast %120 : vector<1x16x48xf32> to vector<16x48xf32>
    %c5_76 = arith.constant 5 : index
    %c0_77 = arith.constant 0 : index
    %c0_78 = arith.constant 0 : index
    %122 = vector.load %arg3[%c5_76, %c0_77, %c0_78] : memref<6x16x1xf32, #tpu.memory_space<vmem>>, vector<1x16x1xf32>
    %123 = vector.shape_cast %122 : vector<1x16x1xf32> to vector<16x1xf32>
    %c5_79 = arith.constant 5 : index
    %c0_80 = arith.constant 0 : index
    %c0_81 = arith.constant 0 : index
    %124 = vector.load %arg4[%c5_79, %c0_80, %c0_81] : memref<6x16x1xf32, #tpu.memory_space<vmem>>, vector<1x16x1xf32>
    %125 = vector.shape_cast %124 : vector<1x16x1xf32> to vector<16x1xf32>
    %c5_82 = arith.constant 5 : index
    %c0_83 = arith.constant 0 : index
    %c0_84 = arith.constant 0 : index
    %126 = vector.load %arg6[%c5_82, %c0_83, %c0_84] : memref<6x1x512xf32, #tpu.memory_space<vmem>>, vector<1x1x512xf32>
    %127 = vector.shape_cast %126 : vector<1x1x512xf32> to vector<1x512xf32>
    %c32_i32 = arith.constant 32 : i32
    %128 = tpu.dynamic_rotate %119 by %c32_i32 dim 1 : vector<16x512xf32>, i32 -> vector<16x512xf32>
    %129 = arith.mulf %128, %4 : vector<16x512xf32>
    %c480_i32 = arith.constant 480 : i32
    %130 = tpu.dynamic_rotate %119 by %c480_i32 dim 1 : vector<16x512xf32>, i32 -> vector<16x512xf32>
    %131 = vector.broadcast %127 : vector<1x512xf32> to vector<16x512xf32>
    %132 = arith.mulf %130, %131 : vector<16x512xf32>
    %133 = tpu.concatenate %129, %119, %132 in 0 : vector<16x512xf32>, vector<16x512xf32>, vector<16x512xf32> -> vector<48x512xf32>
    %cst_85 = arith.constant dense<0.000000e+00> : vector<16x512xf32>
    %134 = tpu.matmul %121, %133, %cst_85 {dimension_numbers = #tpu.dot_dimension_numbers<[1], [0], [0], [1], [0, 0, 1, 1], [], []>} : vector<16x48xf32>, vector<48x512xf32>, vector<16x512xf32> -> vector<16x512xf32>
    %135 = vector.broadcast %123 : vector<16x1xf32> to vector<16x512xf32>
    %136 = arith.mulf %134, %135 : vector<16x512xf32>
    %137 = vector.broadcast %125 : vector<16x1xf32> to vector<16x512xf32>
    %138 = arith.addf %136, %137 : vector<16x512xf32>
    %cst_86 = arith.constant 0.000000e+00 : f32
    %139 = vector.broadcast %cst_86 : f32 to vector<16x512xf32>
    %140 = arith.maximumf %138, %139 : vector<16x512xf32>
    %c480_i32_87 = arith.constant 480 : i32
    %141 = tpu.dynamic_rotate %140 by %c480_i32_87 dim 1 : vector<16x512xf32>, i32 -> vector<16x512xf32>
    %142 = arith.maximumf %140, %141 : vector<16x512xf32>
    %c0_88 = arith.constant 0 : index
    %c0_89 = arith.constant 0 : index
    %c0_90 = arith.constant 0 : index
    %143 = vector.load %arg7[%c0_88, %c0_89, %c0_90] : memref<1x16x512xf32, #tpu.memory_space<vmem>>, vector<1x16x512xf32>
    %144 = vector.shape_cast %143 : vector<1x16x512xf32> to vector<16x512xf32>
    %145 = vector.shape_cast %142 : vector<16x512xf32> to vector<1x16x512xf32>
    tpu.vector_store %arg7[%c0_88, %c0_89, %c0_90], %145 {strides = array<i32>} : memref<1x16x512xf32, #tpu.memory_space<vmem>>, vector<1x16x512xf32>,
    return
  }
  func.func @transform_0(%arg0: i32) -> (i32, i32, i32) {
    %c0_i32 = arith.constant 0 : i32
    %c0_i32_0 = arith.constant 0 : i32
    %c0_i32_1 = arith.constant 0 : i32
    return %arg0, %c0_i32, %c0_i32_0 : i32, i32, i32
  }
  func.func @transform_1(%arg0: i32) -> (i32, i32, i32) {
    %c0_i32 = arith.constant 0 : i32
    %c0_i32_0 = arith.constant 0 : i32
    %c0_i32_1 = arith.constant 0 : i32
    %c0_i32_2 = arith.constant 0 : i32
    return %c0_i32, %c0_i32_0, %c0_i32_1 : i32, i32, i32
  }
  func.func @transform_2(%arg0: i32) -> (i32, i32, i32) {
    %c0_i32 = arith.constant 0 : i32
    %c0_i32_0 = arith.constant 0 : i32
    %c0_i32_1 = arith.constant 0 : i32
    %c0_i32_2 = arith.constant 0 : i32
    return %c0_i32, %c0_i32_0, %c0_i32_1 : i32, i32, i32
  }
  func.func @transform_3(%arg0: i32) -> (i32, i32, i32) {
    %c0_i32 = arith.constant 0 : i32
    %c0_i32_0 = arith.constant 0 : i32
    %c0_i32_1 = arith.constant 0 : i32
    %c0_i32_2 = arith.constant 0 : i32
    return %c0_i32, %c0_i32_0, %c0_i32_1 : i32, i32, i32
  }
  func.func @transform_4(%arg0: i32) -> (i32, i32) {
    %c0_i32 = arith.constant 0 : i32
    %c0_i32_0 = arith.constant 0 : i32
    %c0_i32_1 = arith.constant 0 : i32
    return %c0_i32, %c0_i32_0 : i32, i32
  }
  func.func @transform_5(%arg0: i32) -> (i32, i32, i32) {
    %c0_i32 = arith.constant 0 : i32
    %c0_i32_0 = arith.constant 0 : i32
    %c0_i32_1 = arith.constant 0 : i32
    %c0_i32_2 = arith.constant 0 : i32
    return %c0_i32, %c0_i32_0, %c0_i32_1 : i32, i32, i32
  }
  func.func @transform_6(%arg0: i32) -> (i32, i32, i32) {
    %c0_i32 = arith.constant 0 : i32
    %c0_i32_0 = arith.constant 0 : i32
    %c0_i32_1 = arith.constant 0 : i32
    return %arg0, %c0_i32, %c0_i32_0 : i32, i32, i32
  }
}

</mosaic_0001>

<bundles_post_ra>
// kernel: encoder_forward.1
= control target key start
LH: loop header
LB: loop body
LE: loop exit
PB: predicated region body
PF: predicated region fallthrough
CT: control target
= control target key end

     0   :  { %s2287_s25 = smov 1   ;;  %s2288_s14 = smov 127   ;;  %v2289_v12 = vmov 0.0   ;;  %v2290_v13 = vmov 0   ;;  %v33_v18 = vlaneseq  ;;  %vm149_vm2 = vcmask 392192   ;;  %s3388_s0 = inlined_call_operand.vmem [shape: f32[1,16,512], index: 0, kind: input, shape index: {}]   ;;  %s3389_s2 = inlined_call_operand.vmem [shape: f32[6,16,1], index: 2, kind: input, shape index: {}]   ;;  %s3390_s3 = inlined_call_operand.vmem [shape: f32[6,16,1], index: 3, kind: input, shape index: {}]   ;;  %s3391_s4 = inlined_call_operand.vmem [shape: f32[1,512], index: 4, kind: input, shape index: {}]   ;;  %s3392_s5 = inlined_call_operand.vmem [shape: f32[6,1,512], index: 5, kind: input, shape index: {}]   ;;  %s3393_s1 = inlined_call_operand.vmem [shape: f32[6,16,48], index: 1, kind: input, shape index: {}]   ;;  %s3394_s6 = inlined_call_operand.vmem [shape: f32[1,16,512], index: 6, kind: output, shape index: {}]  }
   0x1   :  { %v2339_v0 = vld [vmem:[%s3388_s0 + $0x8] sm:$0xff]  ;;  %v2344_v1 = vld [vmem:[%s3388_s0] sm:$0xff]  ;;  %v2363_v4 = vld [vmem:[%s3388_s0 + $0x30] sm:$0xff]  ;;  %220 = vmatprep.mubr.f32.mxu0 %v2289_v12  ;;  %297 = vmatprep.mubr.f32.mxu1 %v2289_v12  ;;  %s2291_s29 = smov 2   ;;  %s2292_s30 = smov 126  }
   0x2   :  { %64 = vrot.lane.b32.xlu1 %v2339_v0, %s2287_s25  ;;  %60 = vrot.lane.b32.xlu0 %v2344_v1, %s2287_s25  ;;  %v2351_v2 = vld [vmem:[%s3388_s0 + $0x28] sm:$0xff]  ;;  %v2356_v3 = vld [vmem:[%s3388_s0 + $0x20] sm:$0xff]  ;;  %v34_v19 = vshrl.u32 %v33_v18, 7  ;;  %v2422_v20 = vand.u32 127, %v33_v18  ;;  %s2293_s20 = smov 4   ;;  %s2294_s21 = smov 124  }
   0x3   :  { %v2368_v5 = vld [vmem:[%s3388_s0 + $0x10] sm:$0xff]  ;;  %v2375_v6 = vld [vmem:[%s3388_s0 + $0x38] sm:$0xff]  ;;  %v2131_v8 = vpack.c.bf16 %v2351_v2, %v2339_v0  ;;  %v2133_v9 = vpack.c.bf16 %v2356_v3, %v2344_v1  ;;  %2286 = vset.pattern.permute.xlu1 %v2290_v13  ;;  %2285 = vset.pattern.permute.xlu0 %v2290_v13  ;;  %v56_v14 = vld [vmem:[%s3389_s2 + $0x8] sm:$0xff]  ;;  %s2295_s11 = smov 8   ;;  %s2296_s12 = smov 120  }
   0x4   :  { %v2380_v7 = vld [vmem:[%s3388_s0 + $0x18] sm:$0xff]  ;;  %v2145_v11 = vpack.c.bf16 %v2363_v4, %v2368_v5  ;;  %v55_v15 = vld [vmem:[%s3389_s2] sm:$0xff]  ;;  %v58_v17 = vld [vmem:[%s3390_s3 + $0x8] sm:$0xff]  ;;  %v2424_v21 = vsub.s32 1, %v34_v19  ;;  %vm78_vm0 = vcmp.lt.s32.totalorder %v2422_v20, 1  ;;  %v2435_v29 = vsub.s32 2, %v34_v19 }
   0x5   :  { %v2143_v10 = vpack.c.bf16 %v2375_v6, %v2380_v7  ;;  %v57_v16 = vld [vmem:[%s3390_s3] sm:$0xff]  ;;  %v2441_v33 = vsub.s32 0, %v34_v19  ;;  %v2443_v34 = vsub.s32 3, %v34_v19  ;;  %vm111_vm1 = vcmp.lt.s32.totalorder %v2422_v20, 127  ;;  %s2298_s26 = smov 112   ;;  %s2299_s16 = smov 32  }
   0x6   :  { %66 = vrot.lane.b32.xlu1 %v2351_v2, %s2287_s25  ;;  %62 = vrot.lane.b32.xlu0 %v2356_v3, %s2287_s25  ;;  %v31_v22 = vld [vmem:[%s3391_s4] sm:$0xf]  ;;  %vm413_vm3 = vcmp.lt.s32.totalorder %v2422_v20, 2  ;;  %vm446_vm4 = vcmp.lt.s32.totalorder %v2422_v20, 126  ;;  %vm747_vm5 = vcmp.lt.s32.totalorder %v2422_v20, 4  ;;  %vm780_vm6 = vcmp.lt.s32.totalorder %v2422_v20, 124 }
   0x7   :  { %v2431_v25 = vrot.slane %v31_v22, %v2424_v21  ;;  %v2446_v38 = vrot.slane %v31_v22, %v2435_v29  ;;  %v2453_v41 = vrot.slane %v31_v22, %v2441_v33  ;;  %v2456_v42 = vrot.slane %v31_v22, %v2443_v34  ;;  %v59_v60 = vld [vmem:[%s3392_s5] sm:$0xf]  ;;  %s2300_s17 = smov 96  }
   0x8   :  { %v124_v61 = vrot.slane %v59_v60, %v2441_v33  ;;  %v132_v18 = vrot.slane %v59_v60, %v2435_v29  ;;  %vm1081_vm7 = vcmp.lt.s32.totalorder %v2422_v20, 8  ;;  %vm1114_vm8 = vcmp.lt.s32.totalorder %v2422_v20, 120 }
   0x9   :  { %vm1415_vm9 = vcmp.lt.s32.totalorder %v2422_v20, 16  ;;  %vm1448_vm10 = vcmp.lt.s32.totalorder %v2422_v20, 112  ;;  %vm1749_vm11 = vcmp.lt.s32.totalorder %v2422_v20, 32  ;;  %vm1782_vm12 = vcmp.lt.s32.totalorder %v2422_v20, 96 }
   0xa   :  { %70 = vrot.lane.b32.xlu1 %v2363_v4, %s2287_s25  ;;  %68 = vrot.lane.b32.xlu0 %v2368_v5, %s2287_s25 }
   0xe   :  { %74 = vrot.lane.b32.xlu1 %v2375_v6, %s2287_s25  ;;  %72 = vrot.lane.b32.xlu0 %v2380_v7, %s2287_s25  ;;  %s2297_s25 = smov 16  }
  0x12   :  { %97 = vrot.lane.b32.xlu1 %v2356_v3, %s2288_s14  ;;  %95 = vrot.lane.b32.xlu0 %v2344_v1, %s2288_s14  ;;  %v136_v1 = vrot.slane %v59_v60, %v2443_v34 }
  0x16   :  { %101 = vrot.lane.b32.xlu1 %v2351_v2, %s2288_s14  ;;  %99 = vrot.lane.b32.xlu0 %v2339_v0, %s2288_s14 }
  0x1a   :  { %105 = vrot.lane.b32.xlu1 %v2363_v4, %s2288_s14  ;;  %103 = vrot.lane.b32.xlu0 %v2368_v5, %s2288_s14 }
  0x1e   :  { %109 = vrot.lane.b32.xlu1 %v2375_v6, %s2288_s14  ;;  %107 = vrot.lane.b32.xlu0 %v2380_v7, %s2288_s14 }
  0x22   :  { %317 = vperm.xlu1 %2286, %v56_v14   ;;  %312 = vperm.xlu0 %2285, %v55_v15   ;;  %v128_v15 = vrot.slane %v59_v60, %v2424_v21 }
  0x26   :  { %330 = vperm.xlu1 %2286, %v57_v16   ;;  %335 = vperm.xlu0 %2285, %v58_v17  }
  0x74   :  { %v65_v23 = vpop.permute.xlu1 %64  ;;  %v61_v24 = vpop.permute.xlu0 %60 }
  0x75   :  { %v83_v26 = vsel %vm78_vm0, %v61_v24, %v65_v23 }
  0x76   :  { %v88_v31 = vmul.f32 %v83_v26, %v2431_v25 }
  0x78   :  { %v67_v27 = vpop.permute.xlu1 %66  ;;  %v63_v28 = vpop.permute.xlu0 %62 }
  0x79   :  { %v84_v30 = vsel %vm78_vm0, %v63_v28, %v67_v27 }
  0x7a   :  { %v92_v32 = vmul.f32 %v84_v30, %v2431_v25  ;;  %v53_v30 = vld [vmem:[%s3393_s1] sm:$0xff] }
  0x7c   :  { %v71_v35 = vpop.permute.xlu1 %70  ;;  %v69_v36 = vpop.permute.xlu0 %68  ;;  %v2127_v37 = vpack.c.bf16 %v92_v32, %v88_v31 }
  0x7d   :  { %v82_v39 = vsel %vm78_vm0, %v67_v27, %v71_v35  ;;  %v81_v40 = vsel %vm78_vm0, %v65_v23, %v69_v36 }
  0x7e   :  { %2128 = vmatprep.subr.bf16.mxu0 %v2127_v37  ;;  %v89_v45 = vmul.f32 %v81_v40, %v2446_v38  ;;  %v93_v46 = vmul.f32 %v82_v39, %v2446_v38 }
  0x80   :  { %v75_v43 = vpop.permute.xlu1 %74  ;;  %v73_v44 = vpop.permute.xlu0 %72  ;;  %v2141_v59 = vpack.c.bf16 %v93_v46, %v89_v45 }
  0x81   :  { %v86_v47 = vsel %vm78_vm0, %v75_v43, %v63_v28  ;;  %v85_v48 = vsel %vm78_vm0, %v73_v44, %v61_v24  ;;  %v79_v49 = vsel %vm78_vm0, %v69_v36, %v73_v44  ;;  %v80_v50 = vsel %vm78_vm0, %v71_v35, %v75_v43  ;;  %v54_v35 = vld [vmem:[%s3393_s1 + $0x8] sm:$0xff] }
  0x82   :  { %v87_v51 = vmul.f32 %v85_v48, %v2453_v41  ;;  %v91_v52 = vmul.f32 %v86_v47, %v2453_v41  ;;  %v90_v53 = vmul.f32 %v79_v49, %v2456_v42  ;;  %v94_v54 = vmul.f32 %v80_v50, %v2456_v42 }
  0x84   :  { %v98_v55 = vpop.permute.xlu1 %97  ;;  %v96_v56 = vpop.permute.xlu0 %95  ;;  %v2129_v57 = vpack.c.bf16 %v91_v52, %v87_v51  ;;  %v2139_v58 = vpack.c.bf16 %v94_v54, %v90_v53 }
  0x86   :  { %2130 = vmatpush1.bf16.msra.mxu0 %v2129_v57  ;;  %2140 = vmatprep.subr.bf16.mxu1 %v2139_v58 }
  0x87   :  { %2142 = vmatpush1.bf16.msra.mxu1 %v2141_v59  ;;  %2132 = vmatprep.subr.bf16.mxu0 %v2131_v8 }
  0x88   :  { %v102_v62 = vpop.permute.xlu1 %101  ;;  %v100_v63 = vpop.permute.xlu0 %99  ;;  %2144 = vmatprep.subr.bf16.mxu1 %v2143_v10 }
  0x89   :  { %v117_v13 = vsel %vm111_vm1, %v98_v55, %v102_v62  ;;  %v116_v14 = vsel %vm111_vm1, %v96_v56, %v100_v63 }
  0x8a   :  { %2134 = vmatpush1.bf16.msra.mxu0 %v2133_v9  ;;  %v145_v0 = vmul.f32 %v124_v61, %v117_v13  ;;  %v141_v2 = vmul.f32 %v124_v61, %v116_v14 }
  0x8b   :  { %2146 = vmatpush1.bf16.msra.mxu1 %v2145_v11 }
  0x8c   :  { %v106_v6 = vpop.permute.xlu1 %105  ;;  %v104_v7 = vpop.permute.xlu0 %103  ;;  %v2137_v5 = vpack.c.bf16 %v145_v0, %v141_v2 }
  0x8d   :  { %v115_v8 = vsel %vm111_vm1, %v102_v62, %v106_v6  ;;  %v114_v10 = vsel %vm111_vm1, %v100_v63, %v104_v7 }
  0x8e   :  { %v146_v16 = vmul.f32 %v128_v15, %v115_v8  ;;  %v142_v17 = vmul.f32 %v128_v15, %v114_v10 }
  0x90   :  { %v110_v3 = vpop.permute.xlu1 %109  ;;  %v108_v9 = vpop.permute.xlu0 %107  ;;  %v2135_v4 = vpack.c.bf16 %v146_v16, %v142_v17 }
  0x91   :  { %v113_v11 = vsel %vm111_vm1, %v106_v6, %v110_v3  ;;  %v119_v19 = vsel %vm111_vm1, %v110_v3, %v98_v55  ;;  %v112_v22 = vsel %vm111_vm1, %v104_v7, %v108_v9  ;;  %v118_v23 = vsel %vm111_vm1, %v108_v9, %v96_v56 }
  0x92   :  { %v147_v24 = vmul.f32 %v132_v18, %v113_v11  ;;  %v148_v26 = vmul.f32 %v136_v1, %v119_v19  ;;  %v143_v27 = vmul.f32 %v132_v18, %v112_v22  ;;  %v144_v28 = vmul.f32 %v136_v1, %v118_v23  ;;  %2136 = vmatprep.subr.bf16.mxu0 %v2135_v4 }
  0x93   :  { %2138 = vmatpush1.bf16.msra.mxu0 %v2137_v5 }
  0x94   :  { %v2147_v31 = vpack.c.bf16 %v148_v26, %v144_v28  ;;  %v2149_v32 = vpack.c.bf16 %v147_v24, %v143_v27 }
  0x96   :  { %2068 = vmatmul.mubr.msk.f32.vlgmr.msra.gmra.mrb[0].mxu0 %vm149_vm2, %v53_v30  ;;  %2148 = vmatprep.subr.bf16.mxu1 %v2147_v31 }
  0x97   :  { %2150 = vmatpush1.bf16.msra.mxu1 %v2149_v32  ;;  %226 = vmatprep.mubr.f32.mxu0 %v2289_v12 }
  0x9a   :  { %2069 = vmatmul.mubr.msk.f32.gmra.mrb[2].mxu0 %vm149_vm2, %v54_v35  ;;  %2070 = vmatmul.mubr.msk.f32.vlgmr.msra.gmra.mrb[0].mxu1 %vm149_vm2, %v53_v30 }
  0x9b   :  { %303 = vmatprep.mubr.f32.mxu1 %v2289_v12  ;;  %554 = vmatprep.mubr.f32.mxu0 %v2289_v12 }
  0x9e   :  { %2071 = vmatmul.mubr.msk.f32.gmra.mrb[2].mxu1 %vm149_vm2, %v54_v35 }
  0x9f   :  { %631 = vmatprep.mubr.f32.mxu1 %v2289_v12 }
  0xa1   :  { %v318_v36 = vpop.permute.xlu1 %317  ;;  %v313_v37 = vpop.permute.xlu0 %312 }
  0xa5   :  { %v331_v40 = vpop.permute.xlu1 %330  ;;  %v336_v54 = vpop.permute.xlu0 %335 }
 0x169   :  { %v222_v39 = vpop.f32.mrb[0].mxu0 }
 0x16a   :  { %v320_v43 = vmul.f32 %v313_v37, %v222_v39  ;;  %v224_v44 = vpop.f32.mrb[1].mxu0 }
 0x16b   :  { %v321_v46 = vmul.f32 %v313_v37, %v224_v44 }
 0x16c   :  { %v338_v45 = vadd.f32 %v331_v40, %v320_v43 }
 0x16d   :  { %v228_v47 = vpop.f32.mrb[2].mxu0  ;;  %v299_v48 = vpop.f32.mrb[0].mxu1  ;;  %v339_v59 = vadd.f32 %v331_v40, %v321_v46 }
 0x16e   :  { %v324_v49 = vmul.f32 %v318_v36, %v228_v47  ;;  %v322_v50 = vmul.f32 %v313_v37, %v299_v48  ;;  %v230_v51 = vpop.f32.mrb[3].mxu0  ;;  %v301_v52 = vpop.f32.mrb[1].mxu1  ;;  %v346_v53 = vmax.f32 %v338_v45, 0.0 }
 0x16f   :  { %v325_v57 = vmul.f32 %v318_v36, %v230_v51  ;;  %v323_v62 = vmul.f32 %v313_v37, %v301_v52  ;;  %v347_v15 = vmax.f32 %v339_v59, 0.0  ;;  %v2075_v51 = vld [vmem:[%s3389_s2 + $0x18] sm:$0xff] }
 0x170   :  { %v342_v55 = vadd.f32 %v336_v54, %v324_v49  ;;  %v340_v56 = vadd.f32 %v331_v40, %v322_v50  ;;  %354 = vrot.lane.b32.xlu1 %v346_v53, %s2288_s14  ;;  %v2074_v49 = vld [vmem:[%s3389_s2 + $0x10] sm:$0xff]  ;;  %v2077_v52 = vld [vmem:[%s3390_s3 + $0x18] sm:$0xff] }
 0x171   :  { %v305_v58 = vpop.f32.mrb[2].mxu1  ;;  %v343_v0 = vadd.f32 %v336_v54, %v325_v57  ;;  %v341_v2 = vadd.f32 %v331_v40, %v323_v62  ;;  %v2076_v50 = vld [vmem:[%s3390_s3 + $0x10] sm:$0xff] }
 0x172   :  { %v350_v60 = vmax.f32 %v342_v55, 0.0  ;;  %v348_v61 = vmax.f32 %v340_v56, 0.0  ;;  %v326_v63 = vmul.f32 %v318_v36, %v305_v58  ;;  %v307_v13 = vpop.f32.mrb[3].mxu1 }
 0x173   :  { %v327_v7 = vmul.f32 %v318_v36, %v307_v13  ;;  %v351_v8 = vmax.f32 %v343_v0, 0.0  ;;  %v349_v10 = vmax.f32 %v341_v2, 0.0 }
 0x174   :  { %v344_v14 = vadd.f32 %v336_v54, %v326_v63  ;;  %362 = vrot.lane.b32.xlu1 %v348_v61, %s2288_s14  ;;  %356 = vrot.lane.b32.xlu0 %v350_v60, %s2288_s14 }
 0x175   :  { %v345_v16 = vadd.f32 %v336_v54, %v327_v7 }
 0x176   :  { %v352_v6 = vmax.f32 %v344_v14, 0.0 }
 0x177   :  { %v353_v17 = vmax.f32 %v345_v16, 0.0 }
 0x178   :  { %358 = vrot.lane.b32.xlu1 %v347_v15, %s2288_s14  ;;  %364 = vrot.lane.b32.xlu0 %v352_v6, %s2288_s14 }
 0x17c   :  { %366 = vrot.lane.b32.xlu1 %v349_v10, %s2288_s14  ;;  %360 = vrot.lane.b32.xlu0 %v351_v8, %s2288_s14 }
 0x180   :  { %368 = vrot.lane.b32.xlu0 %v353_v17, %s2288_s14 }
 0x1e2   :  { %v355_v18 = vpop.permute.xlu1 %354 }
 0x1e6   :  { %v363_v1 = vpop.permute.xlu1 %362  ;;  %v357_v3 = vpop.permute.xlu0 %356 }
 0x1ea   :  { %v359_v9 = vpop.permute.xlu1 %358  ;;  %v365_v4 = vpop.permute.xlu0 %364 }
 0x1eb   :  { %v374_v5 = vsel %vm111_vm1, %v355_v18, %v359_v9  ;;  %v372_v19 = vsel %vm111_vm1, %v359_v9, %v363_v1 }
 0x1ec   :  { %v2532_v11 = vmax.f32 %v346_v53, %v374_v5  ;;  %v2542_v27 = vmax.f32 %v347_v15, %v372_v19 }
 0x1ee   :  { %397 = vrot.lane.b32.xlu1 %v2532_v11, %s2291_s29  ;;  %v367_v22 = vpop.permute.xlu1 %366  ;;  %v361_v23 = vpop.permute.xlu0 %360 }
 0x1ef   :  { %v373_v24 = vsel %vm111_vm1, %v361_v23, %v365_v4  ;;  %v375_v26 = vsel %vm111_vm1, %v357_v3, %v361_v23  ;;  %v370_v31 = vsel %vm111_vm1, %v363_v1, %v367_v22  ;;  %v376_v32 = vsel %vm111_vm1, %v367_v22, %v355_v18 }
 0x1f0   :  { %v2544_v28 = vmax.f32 %v350_v60, %v375_v26  ;;  %v2546_v30 = vmax.f32 %v351_v8, %v373_v24  ;;  %v2564_v43 = vmax.f32 %v348_v61, %v370_v31  ;;  %v2566_v44 = vmax.f32 %v349_v10, %v376_v32  ;;  %v2078_v24 = vld [vmem:[%s3392_s5 + $0x4] sm:$0xf] }
 0x1f1   :  { %v463_v32 = vrot.slane %v2078_v24, %v2424_v21 }
 0x1f2   :  { %401 = vrot.lane.b32.xlu1 %v2542_v27, %s2291_s29  ;;  %399 = vrot.lane.b32.xlu0 %v2544_v28, %s2291_s29  ;;  %v369_v35 = vpop.permute.xlu0 %368  ;;  %v2155_v36 = vpack.c.bf16 %v2546_v30, %v2542_v27  ;;  %v2157_v37 = vpack.c.bf16 %v2544_v28, %v2532_v11 }
 0x1f3   :  { %v371_v39 = vsel %vm111_vm1, %v365_v4, %v369_v35  ;;  %v377_v40 = vsel %vm111_vm1, %v369_v35, %v357_v3 }
 0x1f4   :  { %v2568_v45 = vmax.f32 %v352_v6, %v371_v39  ;;  %v2570_v46 = vmax.f32 %v353_v17, %v377_v40 }
 0x1f6   :  { %405 = vrot.lane.b32.xlu1 %v2564_v43, %s2291_s29  ;;  %403 = vrot.lane.b32.xlu0 %v2546_v30, %s2291_s29  ;;  %v2167_v47 = vpack.c.bf16 %v2570_v46, %v2566_v44  ;;  %v2169_v48 = vpack.c.bf16 %v2568_v45, %v2564_v43 }
 0x1fa   :  { %409 = vrot.lane.b32.xlu1 %v2566_v44, %s2291_s29  ;;  %407 = vrot.lane.b32.xlu0 %v2568_v45, %s2291_s29 }
 0x1fe   :  { %430 = vrot.lane.b32.xlu1 %v2532_v11, %s2292_s30  ;;  %411 = vrot.lane.b32.xlu0 %v2570_v46, %s2291_s29 }
 0x202   :  { %434 = vrot.lane.b32.xlu1 %v2542_v27, %s2292_s30  ;;  %432 = vrot.lane.b32.xlu0 %v2544_v28, %s2292_s30  ;;  %v459_v27 = vrot.slane %v2078_v24, %v2441_v33  ;;  %v467_v28 = vrot.slane %v2078_v24, %v2435_v29 }
 0x206   :  { %438 = vrot.lane.b32.xlu1 %v2564_v43, %s2292_s30  ;;  %436 = vrot.lane.b32.xlu0 %v2546_v30, %s2292_s30 }
 0x20a   :  { %442 = vrot.lane.b32.xlu1 %v2566_v44, %s2292_s30  ;;  %440 = vrot.lane.b32.xlu0 %v2568_v45, %s2292_s30 }
 0x20e   :  { %646 = vperm.xlu1 %2286, %v2074_v49   ;;  %444 = vrot.lane.b32.xlu0 %v2570_v46, %s2292_s30 }
 0x212   :  { %664 = vperm.xlu1 %2286, %v2076_v50   ;;  %651 = vperm.xlu0 %2285, %v2075_v51  }
 0x216   :  { %669 = vperm.xlu0 %2285, %v2077_v52  }
 0x260   :  { %v398_v53 = vpop.permute.xlu1 %397 }
 0x264   :  { %v402_v54 = vpop.permute.xlu1 %401  ;;  %v400_v55 = vpop.permute.xlu0 %399 }
 0x265   :  { %v418_v56 = vsel %vm413_vm3, %v398_v53, %v402_v54 }
 0x266   :  { %v423_v60 = vmul.f32 %v418_v56, %v2431_v25 }
 0x268   :  { %v406_v57 = vpop.permute.xlu1 %405  ;;  %v404_v58 = vpop.permute.xlu0 %403 }
 0x269   :  { %v419_v59 = vsel %vm413_vm3, %v400_v55, %v404_v58  ;;  %v416_v2 = vsel %vm413_vm3, %v402_v54, %v406_v57 }
 0x26a   :  { %v427_v61 = vmul.f32 %v419_v59, %v2431_v25  ;;  %v424_v9 = vmul.f32 %v416_v2, %v2446_v38 }
 0x26c   :  { %v410_v62 = vpop.permute.xlu1 %409  ;;  %v408_v63 = vpop.permute.xlu0 %407  ;;  %v2151_v13 = vpack.c.bf16 %v427_v61, %v423_v60  ;;  %v2073_v61 = vld [vmem:[%s3393_s1 + $0x18] sm:$0xff] }
 0x26d   :  { %v417_v14 = vsel %vm413_vm3, %v404_v58, %v408_v63  ;;  %v414_v15 = vsel %vm413_vm3, %v406_v57, %v410_v62  ;;  %v420_v0 = vsel %vm413_vm3, %v410_v62, %v398_v53  ;;  %v2072_v58 = vld [vmem:[%s3393_s1 + $0x10] sm:$0xff] }
 0x26e   :  { %2152 = vmatprep.subr.bf16.mxu0 %v2151_v13  ;;  %v428_v8 = vmul.f32 %v417_v14, %v2446_v38  ;;  %v422_v17 = vmul.f32 %v420_v0, %v2453_v41  ;;  %v425_v18 = vmul.f32 %v414_v15, %v2456_v42 }
 0x270   :  { %v431_v6 = vpop.permute.xlu1 %430  ;;  %v412_v7 = vpop.permute.xlu0 %411  ;;  %v2165_v23 = vpack.c.bf16 %v428_v8, %v424_v9 }
 0x271   :  { %v415_v10 = vsel %vm413_vm3, %v408_v63, %v412_v7  ;;  %v421_v16 = vsel %vm413_vm3, %v412_v7, %v400_v55 }
 0x272   :  { %v426_v1 = vmul.f32 %v421_v16, %v2453_v41  ;;  %v429_v3 = vmul.f32 %v415_v10, %v2456_v42 }
 0x274   :  { %v2153_v4 = vpack.c.bf16 %v426_v1, %v422_v17  ;;  %v435_v5 = vpop.permute.xlu1 %434  ;;  %v433_v19 = vpop.permute.xlu0 %432  ;;  %v2163_v22 = vpack.c.bf16 %v429_v3, %v425_v18 }
 0x276   :  { %2154 = vmatpush1.bf16.msra.mxu0 %v2153_v4  ;;  %2164 = vmatprep.subr.bf16.mxu1 %v2163_v22 }
 0x277   :  { %2156 = vmatprep.subr.bf16.mxu0 %v2155_v36  ;;  %2166 = vmatpush1.bf16.msra.mxu1 %v2165_v23  ;;  %v451_v36 = vsel %vm446_vm4, %v431_v6, %v435_v5 }
 0x278   :  { %v439_v26 = vpop.permute.xlu1 %438  ;;  %2168 = vmatprep.subr.bf16.mxu1 %v2167_v47  ;;  %v437_v31 = vpop.permute.xlu0 %436  ;;  %v476_v49 = vmul.f32 %v459_v27, %v451_v36 }
 0x279   :  { %v452_v35 = vsel %vm446_vm4, %v433_v19, %v437_v31  ;;  %v449_v30 = vsel %vm446_vm4, %v435_v5, %v439_v26 }
 0x27a   :  { %2158 = vmatpush1.bf16.msra.mxu0 %v2157_v37  ;;  %v480_v44 = vmul.f32 %v459_v27, %v452_v35  ;;  %v477_v11 = vmul.f32 %v463_v32, %v449_v30  ;;  %v471_v37 = vrot.slane %v2078_v24, %v2443_v34 }
 0x27b   :  { %2170 = vmatpush1.bf16.msra.mxu1 %v2169_v48 }
 0x27c   :  { %v443_v39 = vpop.permute.xlu1 %442  ;;  %v441_v40 = vpop.permute.xlu0 %440  ;;  %v2161_v51 = vpack.c.bf16 %v480_v44, %v476_v49 }
 0x27d   :  { %v450_v46 = vsel %vm446_vm4, %v437_v31, %v441_v40  ;;  %v447_v43 = vsel %vm446_vm4, %v439_v26, %v443_v39  ;;  %v453_v45 = vsel %vm446_vm4, %v443_v39, %v431_v6 }
 0x27e   :  { %v481_v47 = vmul.f32 %v463_v32, %v450_v46  ;;  %v478_v54 = vmul.f32 %v467_v28, %v447_v43  ;;  %v479_v55 = vmul.f32 %v471_v37, %v453_v45 }
 0x280   :  { %v445_v48 = vpop.permute.xlu0 %444  ;;  %v2159_v50 = vpack.c.bf16 %v481_v47, %v477_v11 }
 0x281   :  { %v448_v52 = vsel %vm446_vm4, %v441_v40, %v445_v48  ;;  %v454_v53 = vsel %vm446_vm4, %v445_v48, %v433_v19 }
 0x282   :  { %v482_v56 = vmul.f32 %v467_v28, %v448_v52  ;;  %v483_v57 = vmul.f32 %v471_v37, %v454_v53  ;;  %2160 = vmatprep.subr.bf16.mxu0 %v2159_v50 }
 0x283   :  { %2162 = vmatpush1.bf16.msra.mxu0 %v2161_v51 }
 0x284   :  { %v2173_v59 = vpack.c.bf16 %v482_v56, %v478_v54  ;;  %v2171_v60 = vpack.c.bf16 %v483_v57, %v479_v55 }
 0x286   :  { %2079 = vmatmul.mubr.msk.f32.vlgmr.msra.gmra.mrb[4].mxu0 %vm149_vm2, %v2072_v58  ;;  %2172 = vmatprep.subr.bf16.mxu1 %v2171_v60 }
 0x287   :  { %2174 = vmatpush1.bf16.msra.mxu1 %v2173_v59  ;;  %560 = vmatprep.mubr.f32.mxu0 %v2289_v12 }
 0x28a   :  { %2080 = vmatmul.mubr.msk.f32.gmra.mrb[6].mxu0 %vm149_vm2, %v2073_v61  ;;  %2081 = vmatmul.mubr.msk.f32.vlgmr.msra.gmra.mrb[4].mxu1 %vm149_vm2, %v2072_v58 }
 0x28b   :  { %637 = vmatprep.mubr.f32.mxu1 %v2289_v12  ;;  %888 = vmatprep.mubr.f32.mxu0 %v2289_v12 }
 0x28d   :  { %v647_v62 = vpop.permute.xlu1 %646 }
 0x28e   :  { %2082 = vmatmul.mubr.msk.f32.gmra.mrb[6].mxu1 %vm149_vm2, %v2073_v61 }
 0x28f   :  { %965 = vmatprep.mubr.f32.mxu1 %v2289_v12 }
 0x291   :  { %v652_v63 = vpop.permute.xlu0 %651  ;;  %v665_v0 = vpop.permute.xlu1 %664 }
 0x295   :  { %v670_v3 = vpop.permute.xlu0 %669 }
 0x359   :  { %v556_v13 = vpop.f32.mrb[4].mxu0 }
 0x35a   :  { %v654_v14 = vmul.f32 %v647_v62, %v556_v13  ;;  %v558_v15 = vpop.f32.mrb[5].mxu0 }
 0x35b   :  { %v655_v6 = vmul.f32 %v647_v62, %v558_v15 }
 0x35c   :  { %v672_v2 = vadd.f32 %v665_v0, %v654_v14 }
 0x35d   :  { %v562_v7 = vpop.f32.mrb[6].mxu0  ;;  %v633_v8 = vpop.f32.mrb[4].mxu1  ;;  %v673_v5 = vadd.f32 %v665_v0, %v655_v6 }
 0x35e   :  { %v680_v10 = vmax.f32 %v672_v2, 0.0  ;;  %v658_v16 = vmul.f32 %v652_v63, %v562_v7  ;;  %v656_v17 = vmul.f32 %v647_v62, %v633_v8  ;;  %v564_v18 = vpop.f32.mrb[7].mxu0  ;;  %v635_v1 = vpop.f32.mrb[5].mxu1 }
 0x35f   :  { %v659_v19 = vmul.f32 %v652_v63, %v564_v18  ;;  %v657_v26 = vmul.f32 %v647_v62, %v635_v1  ;;  %v681_v27 = vmax.f32 %v673_v5, 0.0  ;;  %v2088_v18 = vld [vmem:[%s3390_s3 + $0x28] sm:$0xff] }
 0x360   :  { %v676_v9 = vadd.f32 %v670_v3, %v658_v16  ;;  %v674_v4 = vadd.f32 %v665_v0, %v656_v17  ;;  %688 = vrot.lane.b32.xlu1 %v680_v10, %s2292_s30  ;;  %v2087_v16 = vld [vmem:[%s3390_s3 + $0x20] sm:$0xff]  ;;  %v2086_v17 = vld [vmem:[%s3389_s2 + $0x28] sm:$0xff] }
 0x361   :  { %v639_v22 = vpop.f32.mrb[6].mxu1  ;;  %v677_v30 = vadd.f32 %v670_v3, %v659_v19  ;;  %v675_v36 = vadd.f32 %v665_v0, %v657_v26 }
 0x362   :  { %v684_v23 = vmax.f32 %v676_v9, 0.0  ;;  %v682_v24 = vmax.f32 %v674_v4, 0.0  ;;  %v660_v31 = vmul.f32 %v652_v63, %v639_v22  ;;  %v641_v32 = vpop.f32.mrb[7].mxu1 }
 0x363   :  { %v661_v40 = vmul.f32 %v652_v63, %v641_v32  ;;  %v685_v44 = vmax.f32 %v677_v30, 0.0  ;;  %v683_v46 = vmax.f32 %v675_v36, 0.0 }
 0x364   :  { %v678_v35 = vadd.f32 %v670_v3, %v660_v31  ;;  %696 = vrot.lane.b32.xlu1 %v682_v24, %s2292_s30  ;;  %690 = vrot.lane.b32.xlu0 %v684_v23, %s2292_s30 }
 0x365   :  { %v679_v11 = vadd.f32 %v670_v3, %v661_v40 }
 0x366   :  { %v686_v39 = vmax.f32 %v678_v35, 0.0 }
 0x367   :  { %v687_v28 = vmax.f32 %v679_v11, 0.0 }
 0x368   :  { %692 = vrot.lane.b32.xlu1 %v681_v27, %s2292_s30  ;;  %698 = vrot.lane.b32.xlu0 %v686_v39, %s2292_s30 }
 0x36c   :  { %700 = vrot.lane.b32.xlu1 %v683_v46, %s2292_s30  ;;  %694 = vrot.lane.b32.xlu0 %v685_v44, %s2292_s30 }
 0x370   :  { %702 = vrot.lane.b32.xlu0 %v687_v28, %s2292_s30 }
 0x3d2   :  { %v689_v37 = vpop.permute.xlu1 %688 }
 0x3d6   :  { %v697_v47 = vpop.permute.xlu1 %696  ;;  %v691_v49 = vpop.permute.xlu0 %690 }
 0x3da   :  { %v693_v43 = vpop.permute.xlu1 %692  ;;  %v699_v45 = vpop.permute.xlu0 %698 }
 0x3db   :  { %v708_v48 = vsel %vm446_vm4, %v689_v37, %v693_v43  ;;  %v706_v51 = vsel %vm446_vm4, %v693_v43, %v697_v47 }
 0x3dc   :  { %v2696_v50 = vmax.f32 %v680_v10, %v708_v48  ;;  %v2706_v56 = vmax.f32 %v681_v27, %v706_v51  ;;  %v2085_v10 = vld [vmem:[%s3389_s2 + $0x20] sm:$0xff] }
 0x3de   :  { %731 = vrot.lane.b32.xlu1 %v2696_v50, %s2293_s20  ;;  %v701_v52 = vpop.permute.xlu1 %700  ;;  %v695_v53 = vpop.permute.xlu0 %694 }
 0x3df   :  { %v707_v54 = vsel %vm446_vm4, %v695_v53, %v699_v45  ;;  %v709_v55 = vsel %vm446_vm4, %v691_v49, %v695_v53  ;;  %v704_v59 = vsel %vm446_vm4, %v697_v47, %v701_v52  ;;  %v710_v60 = vsel %vm446_vm4, %v701_v52, %v689_v37 }
 0x3e0   :  { %v2708_v57 = vmax.f32 %v684_v23, %v709_v55  ;;  %v2710_v58 = vmax.f32 %v685_v44, %v707_v54  ;;  %v2728_v15 = vmax.f32 %v682_v24, %v704_v59  ;;  %v2730_v0 = vmax.f32 %v683_v46, %v710_v60  ;;  %v2089_v54 = vld [vmem:[%s3392_s5 + $0x8] sm:$0xf] }
 0x3e1   :  { %v797_v60 = vrot.slane %v2089_v54, %v2424_v21 }
 0x3e2   :  { %735 = vrot.lane.b32.xlu1 %v2706_v56, %s2293_s20  ;;  %733 = vrot.lane.b32.xlu0 %v2708_v57, %s2293_s20  ;;  %v703_v61 = vpop.permute.xlu0 %702  ;;  %v2179_v62 = vpack.c.bf16 %v2710_v58, %v2706_v56  ;;  %v2181_v63 = vpack.c.bf16 %v2708_v57, %v2696_v50 }
 0x3e3   :  { %v705_v13 = vsel %vm446_vm4, %v699_v45, %v703_v61  ;;  %v711_v14 = vsel %vm446_vm4, %v703_v61, %v691_v49 }
 0x3e4   :  { %v2732_v2 = vmax.f32 %v686_v39, %v705_v13  ;;  %v2734_v6 = vmax.f32 %v687_v28, %v711_v14 }
 0x3e6   :  { %739 = vrot.lane.b32.xlu1 %v2728_v15, %s2293_s20  ;;  %737 = vrot.lane.b32.xlu0 %v2710_v58, %s2293_s20  ;;  %v2191_v7 = vpack.c.bf16 %v2734_v6, %v2730_v0  ;;  %v2193_v8 = vpack.c.bf16 %v2732_v2, %v2728_v15 }
 0x3ea   :  { %743 = vrot.lane.b32.xlu1 %v2730_v0, %s2293_s20  ;;  %741 = vrot.lane.b32.xlu0 %v2732_v2, %s2293_s20 }
 0x3ee   :  { %764 = vrot.lane.b32.xlu1 %v2696_v50, %s2294_s21  ;;  %745 = vrot.lane.b32.xlu0 %v2734_v6, %s2293_s20 }
 0x3f2   :  { %768 = vrot.lane.b32.xlu1 %v2706_v56, %s2294_s21  ;;  %766 = vrot.lane.b32.xlu0 %v2708_v57, %s2294_s21  ;;  %v793_v56 = vrot.slane %v2089_v54, %v2441_v33  ;;  %v801_v57 = vrot.slane %v2089_v54, %v2435_v29 }
 0x3f6   :  { %772 = vrot.lane.b32.xlu1 %v2728_v15, %s2294_s21  ;;  %770 = vrot.lane.b32.xlu0 %v2710_v58, %s2294_s21 }
 0x3fa   :  { %776 = vrot.lane.b32.xlu1 %v2730_v0, %s2294_s21  ;;  %774 = vrot.lane.b32.xlu0 %v2732_v2, %s2294_s21 }
 0x3fe   :  { %980 = vperm.xlu1 %2286, %v2085_v10   ;;  %778 = vrot.lane.b32.xlu0 %v2734_v6, %s2294_s21 }
 0x402   :  { %998 = vperm.xlu1 %2286, %v2087_v16   ;;  %985 = vperm.xlu0 %2285, %v2086_v17  }
 0x406   :  { %1003 = vperm.xlu0 %2285, %v2088_v18  }
 0x450   :  { %v732_v1 = vpop.permute.xlu1 %731 }
 0x454   :  { %v736_v3 = vpop.permute.xlu1 %735  ;;  %v734_v9 = vpop.permute.xlu0 %733 }
 0x455   :  { %v752_v4 = vsel %vm747_vm5, %v732_v1, %v736_v3 }
 0x456   :  { %v757_v23 = vmul.f32 %v752_v4, %v2431_v25 }
 0x458   :  { %v740_v5 = vpop.permute.xlu1 %739  ;;  %v738_v19 = vpop.permute.xlu0 %737 }
 0x459   :  { %v753_v22 = vsel %vm747_vm5, %v734_v9, %v738_v19  ;;  %v750_v36 = vsel %vm747_vm5, %v736_v3, %v740_v5 }
 0x45a   :  { %v761_v24 = vmul.f32 %v753_v22, %v2431_v25  ;;  %v758_v43 = vmul.f32 %v750_v36, %v2446_v38 }
 0x45c   :  { %v744_v26 = vpop.permute.xlu1 %743  ;;  %v742_v31 = vpop.permute.xlu0 %741  ;;  %v2175_v32 = vpack.c.bf16 %v761_v24, %v757_v23  ;;  %v2084_v24 = vld [vmem:[%s3393_s1 + $0x28] sm:$0xff] }
 0x45d   :  { %v751_v35 = vsel %vm747_vm5, %v738_v19, %v742_v31  ;;  %v748_v27 = vsel %vm747_vm5, %v740_v5, %v744_v26  ;;  %v754_v30 = vsel %vm747_vm5, %v744_v26, %v732_v1  ;;  %v2083_v19 = vld [vmem:[%s3393_s1 + $0x20] sm:$0xff] }
 0x45e   :  { %2176 = vmatprep.subr.bf16.mxu0 %v2175_v32  ;;  %v762_v44 = vmul.f32 %v751_v35, %v2446_v38  ;;  %v756_v28 = vmul.f32 %v754_v30, %v2453_v41  ;;  %v759_v37 = vmul.f32 %v748_v27, %v2456_v42 }
 0x460   :  { %v765_v39 = vpop.permute.xlu1 %764  ;;  %v746_v40 = vpop.permute.xlu0 %745  ;;  %v2189_v53 = vpack.c.bf16 %v762_v44, %v758_v43 }
 0x461   :  { %v749_v46 = vsel %vm747_vm5, %v742_v31, %v746_v40  ;;  %v755_v11 = vsel %vm747_vm5, %v746_v40, %v734_v9 }
 0x462   :  { %v760_v47 = vmul.f32 %v755_v11, %v2453_v41  ;;  %v763_v49 = vmul.f32 %v749_v46, %v2456_v42 }
 0x464   :  { %v2177_v45 = vpack.c.bf16 %v760_v47, %v756_v28  ;;  %v769_v48 = vpop.permute.xlu1 %768  ;;  %v767_v51 = vpop.permute.xlu0 %766  ;;  %v2187_v52 = vpack.c.bf16 %v763_v49, %v759_v37 }
 0x466   :  { %2178 = vmatpush1.bf16.msra.mxu0 %v2177_v45  ;;  %2188 = vmatprep.subr.bf16.mxu1 %v2187_v52 }
 0x467   :  { %2180 = vmatprep.subr.bf16.mxu0 %v2179_v62  ;;  %2190 = vmatpush1.bf16.msra.mxu1 %v2189_v53  ;;  %v785_v62 = vsel %vm780_vm6, %v765_v39, %v769_v48 }
 0x468   :  { %v773_v55 = vpop.permute.xlu1 %772  ;;  %2192 = vmatprep.subr.bf16.mxu1 %v2191_v7  ;;  %v771_v59 = vpop.permute.xlu0 %770  ;;  %v810_v10 = vmul.f32 %v793_v56, %v785_v62 }
 0x469   :  { %v786_v61 = vsel %vm780_vm6, %v767_v51, %v771_v59  ;;  %v783_v58 = vsel %vm780_vm6, %v769_v48, %v773_v55 }
 0x46a   :  { %2182 = vmatpush1.bf16.msra.mxu0 %v2181_v63  ;;  %v814_v0 = vmul.f32 %v793_v56, %v786_v61  ;;  %v811_v50 = vmul.f32 %v797_v60, %v783_v58  ;;  %v805_v63 = vrot.slane %v2089_v54, %v2443_v34 }
 0x46b   :  { %2194 = vmatpush1.bf16.msra.mxu1 %v2193_v8 }
 0x46c   :  { %v777_v13 = vpop.permute.xlu1 %776  ;;  %v775_v14 = vpop.permute.xlu0 %774  ;;  %v2185_v17 = vpack.c.bf16 %v814_v0, %v810_v10 }
 0x46d   :  { %v784_v6 = vsel %vm780_vm6, %v771_v59, %v775_v14  ;;  %v781_v15 = vsel %vm780_vm6, %v773_v55, %v777_v13  ;;  %v787_v2 = vsel %vm780_vm6, %v777_v13, %v765_v39 }
 0x46e   :  { %v815_v7 = vmul.f32 %v797_v60, %v784_v6  ;;  %v812_v3 = vmul.f32 %v801_v57, %v781_v15  ;;  %v813_v9 = vmul.f32 %v805_v63, %v787_v2 }
 0x470   :  { %v779_v8 = vpop.permute.xlu0 %778  ;;  %v2183_v16 = vpack.c.bf16 %v815_v7, %v811_v50 }
 0x471   :  { %v782_v18 = vsel %vm780_vm6, %v775_v14, %v779_v8  ;;  %v788_v1 = vsel %vm780_vm6, %v779_v8, %v767_v51 }
 0x472   :  { %v816_v4 = vmul.f32 %v801_v57, %v782_v18  ;;  %v817_v5 = vmul.f32 %v805_v63, %v788_v1  ;;  %2184 = vmatprep.subr.bf16.mxu0 %v2183_v16 }
 0x473   :  { %2186 = vmatpush1.bf16.msra.mxu0 %v2185_v17 }
 0x474   :  { %v2197_v22 = vpack.c.bf16 %v816_v4, %v812_v3  ;;  %v2195_v23 = vpack.c.bf16 %v817_v5, %v813_v9 }
 0x476   :  { %2090 = vmatmul.mubr.msk.f32.vlgmr.msra.gmra.mrb[8].mxu0 %vm149_vm2, %v2083_v19  ;;  %2196 = vmatprep.subr.bf16.mxu1 %v2195_v23 }
 0x477   :  { %2198 = vmatpush1.bf16.msra.mxu1 %v2197_v22  ;;  %894 = vmatprep.mubr.f32.mxu0 %v2289_v12 }
 0x47a   :  { %2091 = vmatmul.mubr.msk.f32.gmra.mrb[10].mxu0 %vm149_vm2, %v2084_v24  ;;  %2092 = vmatmul.mubr.msk.f32.vlgmr.msra.gmra.mrb[8].mxu1 %vm149_vm2, %v2083_v19 }
 0x47b   :  { %971 = vmatprep.mubr.f32.mxu1 %v2289_v12  ;;  %1222 = vmatprep.mubr.f32.mxu0 %v2289_v12 }
 0x47d   :  { %v981_v26 = vpop.permute.xlu1 %980 }
 0x47e   :  { %2093 = vmatmul.mubr.msk.f32.gmra.mrb[10].mxu1 %vm149_vm2, %v2084_v24 }
 0x47f   :  { %1299 = vmatprep.mubr.f32.mxu1 %v2289_v12 }
 0x481   :  { %v986_v31 = vpop.permute.xlu0 %985  ;;  %v999_v30 = vpop.permute.xlu1 %998 }
 0x485   :  { %v1004_v49 = vpop.permute.xlu0 %1003 }
 0x549   :  { %v890_v32 = vpop.f32.mrb[8].mxu0 }
 0x54a   :  { %v988_v35 = vmul.f32 %v981_v26, %v890_v32  ;;  %v892_v27 = vpop.f32.mrb[9].mxu0 }
 0x54b   :  { %v989_v39 = vmul.f32 %v981_v26, %v892_v27 }
 0x54c   :  { %v1006_v36 = vadd.f32 %v999_v30, %v988_v35 }
 0x54d   :  { %v896_v40 = vpop.f32.mrb[10].mxu0  ;;  %v967_v44 = vpop.f32.mrb[8].mxu1  ;;  %v1007_v48 = vadd.f32 %v999_v30, %v989_v39 }
 0x54e   :  { %v1014_v46 = vmax.f32 %v1006_v36, 0.0  ;;  %v992_v11 = vmul.f32 %v986_v31, %v896_v40  ;;  %v990_v28 = vmul.f32 %v981_v26, %v967_v44  ;;  %v898_v37 = vpop.f32.mrb[11].mxu0  ;;  %v969_v47 = vpop.f32.mrb[9].mxu1 }
 0x54f   :  { %v993_v51 = vmul.f32 %v986_v31, %v898_v37  ;;  %v991_v55 = vmul.f32 %v981_v26, %v969_v47  ;;  %v1015_v56 = vmax.f32 %v1007_v48, 0.0  ;;  %v2099_v37 = vld [vmem:[%s3390_s3 + $0x38] sm:$0xff] }
 0x550   :  { %v1010_v43 = vadd.f32 %v1004_v49, %v992_v11  ;;  %v1008_v45 = vadd.f32 %v999_v30, %v990_v28  ;;  %1022 = vrot.lane.b32.xlu1 %v1014_v46, %s2294_s21  ;;  %v2098_v11 = vld [vmem:[%s3390_s3 + $0x30] sm:$0xff]  ;;  %v2097_v28 = vld [vmem:[%s3389_s2 + $0x38] sm:$0xff] }
 0x551   :  { %v973_v52 = vpop.f32.mrb[10].mxu1  ;;  %v1011_v58 = vadd.f32 %v1004_v49, %v993_v51  ;;  %v1009_v62 = vadd.f32 %v999_v30, %v991_v55 }
 0x552   :  { %v1018_v53 = vmax.f32 %v1010_v43, 0.0  ;;  %v1016_v54 = vmax.f32 %v1008_v45, 0.0  ;;  %v994_v59 = vmul.f32 %v986_v31, %v973_v52  ;;  %v975_v60 = vpop.f32.mrb[11].mxu1 }
 0x553   :  { %v995_v14 = vmul.f32 %v986_v31, %v975_v60  ;;  %v1019_v0 = vmax.f32 %v1011_v58, 0.0  ;;  %v1017_v6 = vmax.f32 %v1009_v62, 0.0 }
 0x554   :  { %v1012_v61 = vadd.f32 %v1004_v49, %v994_v59  ;;  %1030 = vrot.lane.b32.xlu1 %v1016_v54, %s2294_s21  ;;  %1024 = vrot.lane.b32.xlu0 %v1018_v53, %s2294_s21 }
 0x555   :  { %v1013_v50 = vadd.f32 %v1004_v49, %v995_v14 }
 0x556   :  { %v1020_v13 = vmax.f32 %v1012_v61, 0.0 }
 0x557   :  { %v1021_v57 = vmax.f32 %v1013_v50, 0.0 }
 0x558   :  { %1026 = vrot.lane.b32.xlu1 %v1015_v56, %s2294_s21  ;;  %1032 = vrot.lane.b32.xlu0 %v1020_v13, %s2294_s21 }
 0x55c   :  { %1034 = vrot.lane.b32.xlu1 %v1017_v6, %s2294_s21  ;;  %1028 = vrot.lane.b32.xlu0 %v1019_v0, %s2294_s21 }
 0x560   :  { %1036 = vrot.lane.b32.xlu0 %v1021_v57, %s2294_s21 }
 0x5c2   :  { %v1023_v63 = vpop.permute.xlu1 %1022 }
 0x5c6   :  { %v1031_v7 = vpop.permute.xlu1 %1030  ;;  %v1025_v10 = vpop.permute.xlu0 %1024 }
 0x5ca   :  { %v1027_v15 = vpop.permute.xlu1 %1026  ;;  %v1033_v2 = vpop.permute.xlu0 %1032 }
 0x5cb   :  { %v1042_v8 = vsel %vm780_vm6, %v1023_v63, %v1027_v15  ;;  %v1040_v17 = vsel %vm780_vm6, %v1027_v15, %v1031_v7 }
 0x5cc   :  { %v2860_v16 = vmax.f32 %v1014_v46, %v1042_v8  ;;  %v2870_v4 = vmax.f32 %v1015_v56, %v1040_v17  ;;  %v2096_v46 = vld [vmem:[%s3389_s2 + $0x30] sm:$0xff] }
 0x5ce   :  { %1065 = vrot.lane.b32.xlu1 %v2860_v16, %s2295_s11  ;;  %v1035_v18 = vpop.permute.xlu1 %1034  ;;  %v1029_v1 = vpop.permute.xlu0 %1028 }
 0x5cf   :  { %v1041_v3 = vsel %vm780_vm6, %v1029_v1, %v1033_v2  ;;  %v1043_v9 = vsel %vm780_vm6, %v1025_v10, %v1029_v1  ;;  %v1038_v22 = vsel %vm780_vm6, %v1031_v7, %v1035_v18  ;;  %v1044_v23 = vsel %vm780_vm6, %v1035_v18, %v1023_v63 }
 0x5d0   :  { %v2872_v5 = vmax.f32 %v1018_v53, %v1043_v9  ;;  %v2874_v19 = vmax.f32 %v1019_v0, %v1041_v3  ;;  %v2892_v27 = vmax.f32 %v1016_v54, %v1038_v22  ;;  %v2894_v30 = vmax.f32 %v1017_v6, %v1044_v23  ;;  %v2100_v3 = vld [vmem:[%s3392_s5 + $0xc] sm:$0xf] }
 0x5d1   :  { %v1131_v23 = vrot.slane %v2100_v3, %v2424_v21 }
 0x5d2   :  { %v2205_v24 = vpack.c.bf16 %v2872_v5, %v2860_v16  ;;  %1069 = vrot.lane.b32.xlu1 %v2870_v4, %s2295_s11  ;;  %1067 = vrot.lane.b32.xlu0 %v2872_v5, %s2295_s11  ;;  %v1037_v26 = vpop.permute.xlu0 %1036  ;;  %v2203_v31 = vpack.c.bf16 %v2874_v19, %v2870_v4 }
 0x5d3   :  { %v1039_v32 = vsel %vm780_vm6, %v1033_v2, %v1037_v26  ;;  %v1045_v35 = vsel %vm780_vm6, %v1037_v26, %v1025_v10 }
 0x5d4   :  { %v2896_v36 = vmax.f32 %v1020_v13, %v1039_v32  ;;  %v2898_v39 = vmax.f32 %v1021_v57, %v1045_v35 }
 0x5d6   :  { %v2217_v40 = vpack.c.bf16 %v2896_v36, %v2892_v27  ;;  %1073 = vrot.lane.b32.xlu1 %v2892_v27, %s2295_s11  ;;  %1071 = vrot.lane.b32.xlu0 %v2874_v19, %s2295_s11  ;;  %v2215_v44 = vpack.c.bf16 %v2898_v39, %v2894_v30 }
 0x5da   :  { %1077 = vrot.lane.b32.xlu1 %v2894_v30, %s2295_s11  ;;  %1075 = vrot.lane.b32.xlu0 %v2896_v36, %s2295_s11 }
 0x5de   :  { %1098 = vrot.lane.b32.xlu1 %v2860_v16, %s2296_s12  ;;  %1079 = vrot.lane.b32.xlu0 %v2898_v39, %s2295_s11 }
 0x5e2   :  { %1102 = vrot.lane.b32.xlu1 %v2870_v4, %s2296_s12  ;;  %1100 = vrot.lane.b32.xlu0 %v2872_v5, %s2296_s12  ;;  %v1127_v4 = vrot.slane %v2100_v3, %v2441_v33  ;;  %v1135_v5 = vrot.slane %v2100_v3, %v2435_v29 }
 0x5e6   :  { %1106 = vrot.lane.b32.xlu1 %v2892_v27, %s2296_s12  ;;  %1104 = vrot.lane.b32.xlu0 %v2874_v19, %s2296_s12 }
 0x5ea   :  { %1110 = vrot.lane.b32.xlu1 %v2894_v30, %s2296_s12  ;;  %1108 = vrot.lane.b32.xlu0 %v2896_v36, %s2296_s12 }
 0x5ee   :  { %1314 = vperm.xlu1 %2286, %v2096_v46   ;;  %1112 = vrot.lane.b32.xlu0 %v2898_v39, %s2296_s12 }
 0x5f2   :  { %1332 = vperm.xlu1 %2286, %v2098_v11   ;;  %1319 = vperm.xlu0 %2285, %v2097_v28  }
 0x5f6   :  { %1337 = vperm.xlu0 %2285, %v2099_v37  }
 0x640   :  { %v1066_v47 = vpop.permute.xlu1 %1065 }
 0x644   :  { %v1070_v49 = vpop.permute.xlu1 %1069  ;;  %v1068_v43 = vpop.permute.xlu0 %1067 }
 0x645   :  { %v1086_v45 = vsel %vm1081_vm7, %v1066_v47, %v1070_v49 }
 0x646   :  { %v1091_v53 = vmul.f32 %v1086_v45, %v2431_v25 }
 0x648   :  { %v1074_v48 = vpop.permute.xlu1 %1073  ;;  %v1072_v51 = vpop.permute.xlu0 %1071 }
 0x649   :  { %v1087_v52 = vsel %vm1081_vm7, %v1068_v43, %v1072_v51  ;;  %v1084_v62 = vsel %vm1081_vm7, %v1070_v49, %v1074_v48 }
 0x64a   :  { %v1095_v54 = vmul.f32 %v1087_v52, %v2431_v25  ;;  %v1092_v15 = vmul.f32 %v1084_v62, %v2446_v38 }
 0x64c   :  { %v1078_v55 = vpop.permute.xlu1 %1077  ;;  %v1076_v59 = vpop.permute.xlu0 %1075  ;;  %v2199_v60 = vpack.c.bf16 %v1095_v54, %v1091_v53  ;;  %v2095_v54 = vld [vmem:[%s3393_s1 + $0x38] sm:$0xff] }
 0x64d   :  { %v1085_v61 = vsel %vm1081_vm7, %v1072_v51, %v1076_v59  ;;  %v1082_v56 = vsel %vm1081_vm7, %v1074_v48, %v1078_v55  ;;  %v1088_v58 = vsel %vm1081_vm7, %v1078_v55, %v1066_v47  ;;  %v2094_v51 = vld [vmem:[%s3393_s1 + $0x30] sm:$0xff] }
 0x64e   :  { %2200 = vmatprep.subr.bf16.mxu0 %v2199_v60  ;;  %v1096_v0 = vmul.f32 %v1085_v61, %v2446_v38  ;;  %v1090_v57 = vmul.f32 %v1088_v58, %v2453_v41  ;;  %v1093_v63 = vmul.f32 %v1082_v56, %v2456_v42 }
 0x650   :  { %v1099_v13 = vpop.permute.xlu1 %1098  ;;  %v1080_v14 = vpop.permute.xlu0 %1079  ;;  %v2213_v1 = vpack.c.bf16 %v1096_v0, %v1092_v15 }
 0x651   :  { %v1083_v6 = vsel %vm1081_vm7, %v1076_v59, %v1080_v14  ;;  %v1089_v50 = vsel %vm1081_vm7, %v1080_v14, %v1068_v43 }
 0x652   :  { %v1094_v7 = vmul.f32 %v1089_v50, %v2453_v41  ;;  %v1097_v10 = vmul.f32 %v1083_v6, %v2456_v42 }
 0x654   :  { %v2201_v2 = vpack.c.bf16 %v1094_v7, %v1090_v57  ;;  %v1103_v8 = vpop.permute.xlu1 %1102  ;;  %v1101_v17 = vpop.permute.xlu0 %1100  ;;  %v2211_v18 = vpack.c.bf16 %v1097_v10, %v1093_v63 }
 0x656   :  { %2202 = vmatpush1.bf16.msra.mxu0 %v2201_v2  ;;  %2212 = vmatprep.subr.bf16.mxu1 %v2211_v18 }
 0x657   :  { %2204 = vmatprep.subr.bf16.mxu0 %v2203_v31  ;;  %2214 = vmatpush1.bf16.msra.mxu1 %v2213_v1  ;;  %v1119_v31 = vsel %vm1114_vm8, %v1099_v13, %v1103_v8 }
 0x658   :  { %v1107_v9 = vpop.permute.xlu1 %1106  ;;  %2216 = vmatprep.subr.bf16.mxu1 %v2215_v44  ;;  %v1105_v22 = vpop.permute.xlu0 %1104  ;;  %v1144_v46 = vmul.f32 %v1127_v4, %v1119_v31 }
 0x659   :  { %v1120_v26 = vsel %vm1114_vm8, %v1101_v17, %v1105_v22  ;;  %v1117_v19 = vsel %vm1114_vm8, %v1103_v8, %v1107_v9 }
 0x65a   :  { %2206 = vmatpush1.bf16.msra.mxu0 %v2205_v24  ;;  %v1148_v30 = vmul.f32 %v1127_v4, %v1120_v26  ;;  %v1145_v16 = vmul.f32 %v1131_v23, %v1117_v19  ;;  %v1139_v24 = vrot.slane %v2100_v3, %v2443_v34 }
 0x65b   :  { %2218 = vmatpush1.bf16.msra.mxu1 %v2217_v40 }
 0x65c   :  { %v1111_v32 = vpop.permute.xlu1 %1110  ;;  %v1109_v35 = vpop.permute.xlu0 %1108  ;;  %v2209_v28 = vpack.c.bf16 %v1148_v30, %v1144_v46 }
 0x65d   :  { %v1118_v39 = vsel %vm1114_vm8, %v1105_v22, %v1109_v35  ;;  %v1115_v27 = vsel %vm1114_vm8, %v1107_v9, %v1111_v32  ;;  %v1121_v36 = vsel %vm1114_vm8, %v1111_v32, %v1099_v13 }
 0x65e   :  { %v1149_v44 = vmul.f32 %v1131_v23, %v1118_v39  ;;  %v1146_v49 = vmul.f32 %v1135_v5, %v1115_v27  ;;  %v1147_v43 = vmul.f32 %v1139_v24, %v1121_v36 }
 0x660   :  { %v1113_v40 = vpop.permute.xlu0 %1112  ;;  %v2207_v11 = vpack.c.bf16 %v1149_v44, %v1145_v16 }
 0x661   :  { %v1116_v37 = vsel %vm1114_vm8, %v1109_v35, %v1113_v40  ;;  %v1122_v47 = vsel %vm1114_vm8, %v1113_v40, %v1101_v17 }
 0x662   :  { %v1150_v45 = vmul.f32 %v1135_v5, %v1116_v37  ;;  %v1151_v48 = vmul.f32 %v1139_v24, %v1122_v47  ;;  %2208 = vmatprep.subr.bf16.mxu0 %v2207_v11 }
 0x663   :  { %2210 = vmatpush1.bf16.msra.mxu0 %v2209_v28 }
 0x664   :  { %v2221_v52 = vpack.c.bf16 %v1150_v45, %v1146_v49  ;;  %v2219_v53 = vpack.c.bf16 %v1151_v48, %v1147_v43 }
 0x666   :  { %2101 = vmatmul.mubr.msk.f32.vlgmr.msra.gmra.mrb[12].mxu0 %vm149_vm2, %v2094_v51  ;;  %2220 = vmatprep.subr.bf16.mxu1 %v2219_v53 }
 0x667   :  { %2222 = vmatpush1.bf16.msra.mxu1 %v2221_v52  ;;  %1228 = vmatprep.mubr.f32.mxu0 %v2289_v12 }
 0x66a   :  { %2102 = vmatmul.mubr.msk.f32.gmra.mrb[14].mxu0 %vm149_vm2, %v2095_v54  ;;  %2103 = vmatmul.mubr.msk.f32.vlgmr.msra.gmra.mrb[12].mxu1 %vm149_vm2, %v2094_v51 }
 0x66b   :  { %1305 = vmatprep.mubr.f32.mxu1 %v2289_v12  ;;  %1556 = vmatprep.mubr.f32.mxu0 %v2289_v12 }
 0x66d   :  { %v1315_v55 = vpop.permute.xlu1 %1314 }
 0x66e   :  { %2104 = vmatmul.mubr.msk.f32.gmra.mrb[14].mxu1 %vm149_vm2, %v2095_v54 }
 0x66f   :  { %1633 = vmatprep.mubr.f32.mxu1 %v2289_v12 }
 0x671   :  { %v1320_v59 = vpop.permute.xlu0 %1319  ;;  %v1333_v58 = vpop.permute.xlu1 %1332 }
 0x675   :  { %v1338_v10 = vpop.permute.xlu0 %1337 }
 0x739   :  { %v1224_v60 = vpop.f32.mrb[12].mxu0 }
 0x73a   :  { %v1322_v61 = vmul.f32 %v1315_v55, %v1224_v60  ;;  %v1226_v56 = vpop.f32.mrb[13].mxu0 }
 0x73b   :  { %v1323_v13 = vmul.f32 %v1315_v55, %v1226_v56 }
 0x73c   :  { %v1340_v62 = vadd.f32 %v1333_v58, %v1322_v61 }
 0x73d   :  { %v1230_v14 = vpop.f32.mrb[14].mxu0  ;;  %v1301_v0 = vpop.f32.mrb[12].mxu1  ;;  %v1341_v8 = vadd.f32 %v1333_v58, %v1323_v13 }
 0x73e   :  { %v1348_v6 = vmax.f32 %v1340_v62, 0.0  ;;  %v1326_v50 = vmul.f32 %v1320_v59, %v1230_v14  ;;  %v1324_v57 = vmul.f32 %v1315_v55, %v1301_v0  ;;  %v1232_v63 = vpop.f32.mrb[15].mxu0  ;;  %v1303_v7 = vpop.f32.mrb[13].mxu1 }
 0x73f   :  { %v1327_v17 = vmul.f32 %v1320_v59, %v1232_v63  ;;  %v1325_v9 = vmul.f32 %v1315_v55, %v1303_v7  ;;  %v1349_v4 = vmax.f32 %v1341_v8, 0.0  ;;  %v2110_v63 = vld [vmem:[%s3390_s3 + $0x48] sm:$0xff] }
 0x740   :  { %v1344_v15 = vadd.f32 %v1338_v10, %v1326_v50  ;;  %v1342_v2 = vadd.f32 %v1333_v58, %v1324_v57  ;;  %1356 = vrot.lane.b32.xlu1 %v1348_v6, %s2296_s12  ;;  %v2109_v50 = vld [vmem:[%s3390_s3 + $0x40] sm:$0xff]  ;;  %v2108_v57 = vld [vmem:[%s3389_s2 + $0x48] sm:$0xff] }
 0x741   :  { %v1307_v18 = vpop.f32.mrb[14].mxu1  ;;  %v1345_v19 = vadd.f32 %v1338_v10, %v1327_v17  ;;  %v1343_v31 = vadd.f32 %v1333_v58, %v1325_v9 }
 0x742   :  { %v1352_v1 = vmax.f32 %v1344_v15, 0.0  ;;  %v1350_v3 = vmax.f32 %v1342_v2, 0.0  ;;  %v1328_v22 = vmul.f32 %v1320_v59, %v1307_v18  ;;  %v1309_v23 = vpop.f32.mrb[15].mxu1 }
 0x743   :  { %v1329_v35 = vmul.f32 %v1320_v59, %v1309_v23  ;;  %v1353_v30 = vmax.f32 %v1345_v19, 0.0  ;;  %v1351_v39 = vmax.f32 %v1343_v31, 0.0 }
 0x744   :  { %v1346_v26 = vadd.f32 %v1338_v10, %v1328_v22  ;;  %1364 = vrot.lane.b32.xlu1 %v1350_v3, %s2296_s12  ;;  %1358 = vrot.lane.b32.xlu0 %v1352_v1, %s2296_s12 }
 0x745   :  { %v1347_v16 = vadd.f32 %v1338_v10, %v1329_v35 }
 0x746   :  { %v1354_v32 = vmax.f32 %v1346_v26, 0.0 }
 0x747   :  { %v1355_v5 = vmax.f32 %v1347_v16, 0.0 }
 0x748   :  { %1360 = vrot.lane.b32.xlu1 %v1349_v4, %s2296_s12  ;;  %1366 = vrot.lane.b32.xlu0 %v1354_v32, %s2296_s12 }
 0x74c   :  { %1368 = vrot.lane.b32.xlu1 %v1351_v39, %s2296_s12  ;;  %1362 = vrot.lane.b32.xlu0 %v1353_v30, %s2296_s12 }
 0x750   :  { %1370 = vrot.lane.b32.xlu0 %v1355_v5, %s2296_s12 }
 0x7b2   :  { %v1357_v24 = vpop.permute.xlu1 %1356 }
 0x7b6   :  { %v1365_v44 = vpop.permute.xlu1 %1364  ;;  %v1359_v46 = vpop.permute.xlu0 %1358 }
 0x7ba   :  { %v1361_v27 = vpop.permute.xlu1 %1360  ;;  %v1367_v36 = vpop.permute.xlu0 %1366 }
 0x7bb   :  { %v1376_v40 = vsel %vm1114_vm8, %v1357_v24, %v1361_v27  ;;  %v1374_v28 = vsel %vm1114_vm8, %v1361_v27, %v1365_v44 }
 0x7bc   :  { %v3024_v11 = vmax.f32 %v1348_v6, %v1376_v40  ;;  %v3034_v45 = vmax.f32 %v1349_v4, %v1374_v28  ;;  %v2107_v6 = vld [vmem:[%s3389_s2 + $0x40] sm:$0xff] }
 0x7be   :  { %1399 = vrot.lane.b32.xlu1 %v3024_v11, %s2297_s25  ;;  %v1369_v37 = vpop.permute.xlu1 %1368  ;;  %v1363_v47 = vpop.permute.xlu0 %1362 }
 0x7bf   :  { %v1375_v49 = vsel %vm1114_vm8, %v1363_v47, %v1367_v36  ;;  %v1377_v43 = vsel %vm1114_vm8, %v1359_v46, %v1363_v47  ;;  %v1372_v52 = vsel %vm1114_vm8, %v1365_v44, %v1369_v37  ;;  %v1378_v53 = vsel %vm1114_vm8, %v1369_v37, %v1357_v24 }
 0x7c0   :  { %v3036_v48 = vmax.f32 %v1352_v1, %v1377_v43  ;;  %v3038_v51 = vmax.f32 %v1353_v30, %v1375_v49  ;;  %v3056_v56 = vmax.f32 %v1350_v3, %v1372_v52  ;;  %v3058_v58 = vmax.f32 %v1351_v39, %v1378_v53  ;;  %v2111_v49 = vld [vmem:[%s3392_s5 + $0x10] sm:$0xf] }
 0x7c1   :  { %v1465_v53 = vrot.slane %v2111_v49, %v2424_v21 }
 0x7c2   :  { %v2229_v54 = vpack.c.bf16 %v3036_v48, %v3024_v11  ;;  %1403 = vrot.lane.b32.xlu1 %v3034_v45, %s2297_s25  ;;  %1401 = vrot.lane.b32.xlu0 %v3036_v48, %s2297_s25  ;;  %v1371_v55 = vpop.permute.xlu0 %1370  ;;  %v2227_v59 = vpack.c.bf16 %v3038_v51, %v3034_v45 }
 0x7c3   :  { %v1373_v60 = vsel %vm1114_vm8, %v1367_v36, %v1371_v55  ;;  %v1379_v61 = vsel %vm1114_vm8, %v1371_v55, %v1359_v46 }
 0x7c4   :  { %v3060_v62 = vmax.f32 %v1354_v32, %v1373_v60  ;;  %v3062_v13 = vmax.f32 %v1355_v5, %v1379_v61 }
 0x7c6   :  { %v2241_v14 = vpack.c.bf16 %v3060_v62, %v3056_v56  ;;  %1407 = vrot.lane.b32.xlu1 %v3056_v56, %s2297_s25  ;;  %1405 = vrot.lane.b32.xlu0 %v3038_v51, %s2297_s25  ;;  %v2239_v0 = vpack.c.bf16 %v3062_v13, %v3058_v58 }
 0x7ca   :  { %1411 = vrot.lane.b32.xlu1 %v3058_v58, %s2297_s25  ;;  %1409 = vrot.lane.b32.xlu0 %v3060_v62, %s2297_s25 }
 0x7ce   :  { %1432 = vrot.lane.b32.xlu1 %v3024_v11, %s2298_s26  ;;  %1413 = vrot.lane.b32.xlu0 %v3062_v13, %s2297_s25 }
 0x7d2   :  { %1436 = vrot.lane.b32.xlu1 %v3034_v45, %s2298_s26  ;;  %1434 = vrot.lane.b32.xlu0 %v3036_v48, %s2298_s26  ;;  %v1461_v45 = vrot.slane %v2111_v49, %v2441_v33  ;;  %v1469_v48 = vrot.slane %v2111_v49, %v2435_v29 }
 0x7d6   :  { %1440 = vrot.lane.b32.xlu1 %v3056_v56, %s2298_s26  ;;  %1438 = vrot.lane.b32.xlu0 %v3038_v51, %s2298_s26 }
 0x7da   :  { %1444 = vrot.lane.b32.xlu1 %v3058_v58, %s2298_s26  ;;  %1442 = vrot.lane.b32.xlu0 %v3060_v62, %s2298_s26 }
 0x7de   :  { %1648 = vperm.xlu1 %2286, %v2107_v6   ;;  %1446 = vrot.lane.b32.xlu0 %v3062_v13, %s2298_s26 }
 0x7e2   :  { %1666 = vperm.xlu1 %2286, %v2109_v50   ;;  %1653 = vperm.xlu0 %2285, %v2108_v57  }
 0x7e6   :  { %1671 = vperm.xlu0 %2285, %v2110_v63  }
 0x830   :  { %v1400_v7 = vpop.permute.xlu1 %1399 }
 0x834   :  { %v1404_v10 = vpop.permute.xlu1 %1403  ;;  %v1402_v15 = vpop.permute.xlu0 %1401 }
 0x835   :  { %v1420_v2 = vsel %vm1415_vm9, %v1400_v7, %v1404_v10 }
 0x836   :  { %v1425_v1 = vmul.f32 %v1420_v2, %v2431_v25 }
 0x838   :  { %v1408_v8 = vpop.permute.xlu1 %1407  ;;  %v1406_v17 = vpop.permute.xlu0 %1405 }
 0x839   :  { %v1421_v18 = vsel %vm1415_vm9, %v1402_v15, %v1406_v17  ;;  %v1418_v31 = vsel %vm1415_vm9, %v1404_v10, %v1408_v8 }
 0x83a   :  { %v1429_v3 = vmul.f32 %v1421_v18, %v2431_v25  ;;  %v1426_v27 = vmul.f32 %v1418_v31, %v2446_v38 }
 0x83c   :  { %v1412_v9 = vpop.permute.xlu1 %1411  ;;  %v1410_v22 = vpop.permute.xlu0 %1409  ;;  %v2223_v23 = vpack.c.bf16 %v1429_v3, %v1425_v1  ;;  %v2106_v3 = vld [vmem:[%s3393_s1 + $0x48] sm:$0xff] }
 0x83d   :  { %v1419_v26 = vsel %vm1415_vm9, %v1406_v17, %v1410_v22  ;;  %v1416_v4 = vsel %vm1415_vm9, %v1408_v8, %v1412_v9  ;;  %v1422_v19 = vsel %vm1415_vm9, %v1412_v9, %v1400_v7  ;;  %v2105_v17 = vld [vmem:[%s3393_s1 + $0x40] sm:$0xff] }
 0x83e   :  { %2224 = vmatprep.subr.bf16.mxu0 %v2223_v23  ;;  %v1430_v30 = vmul.f32 %v1419_v26, %v2446_v38  ;;  %v1424_v5 = vmul.f32 %v1422_v19, %v2453_v41  ;;  %v1427_v24 = vmul.f32 %v1416_v4, %v2456_v42 }
 0x840   :  { %v1433_v32 = vpop.permute.xlu1 %1432  ;;  %v1414_v35 = vpop.permute.xlu0 %1413  ;;  %v2237_v47 = vpack.c.bf16 %v1430_v30, %v1426_v27 }
 0x841   :  { %v1417_v39 = vsel %vm1415_vm9, %v1410_v22, %v1414_v35  ;;  %v1423_v16 = vsel %vm1415_vm9, %v1414_v35, %v1402_v15 }
 0x842   :  { %v1428_v44 = vmul.f32 %v1423_v16, %v2453_v41  ;;  %v1431_v46 = vmul.f32 %v1417_v39, %v2456_v42 }
 0x844   :  { %v2225_v36 = vpack.c.bf16 %v1428_v44, %v1424_v5  ;;  %v1437_v40 = vpop.permute.xlu1 %1436  ;;  %v1435_v28 = vpop.permute.xlu0 %1434  ;;  %v2235_v37 = vpack.c.bf16 %v1431_v46, %v1427_v24 }
 0x846   :  { %2226 = vmatpush1.bf16.msra.mxu0 %v2225_v36  ;;  %2236 = vmatprep.subr.bf16.mxu1 %v2235_v37 }
 0x847   :  { %2228 = vmatprep.subr.bf16.mxu0 %v2227_v59  ;;  %2238 = vmatpush1.bf16.msra.mxu1 %v2237_v47  ;;  %v1453_v59 = vsel %vm1448_vm10, %v1433_v32, %v1437_v40 }
 0x848   :  { %v1441_v43 = vpop.permute.xlu1 %1440  ;;  %2240 = vmatprep.subr.bf16.mxu1 %v2239_v0  ;;  %v1439_v52 = vpop.permute.xlu0 %1438  ;;  %v1478_v6 = vmul.f32 %v1461_v45, %v1453_v59 }
 0x849   :  { %v1454_v55 = vsel %vm1448_vm10, %v1435_v28, %v1439_v52  ;;  %v1451_v51 = vsel %vm1448_vm10, %v1437_v40, %v1441_v43 }
 0x84a   :  { %2230 = vmatpush1.bf16.msra.mxu0 %v2229_v54  ;;  %v1482_v58 = vmul.f32 %v1461_v45, %v1454_v55  ;;  %v1479_v11 = vmul.f32 %v1465_v53, %v1451_v51  ;;  %v1473_v54 = vrot.slane %v2111_v49, %v2443_v34 }
 0x84b   :  { %2242 = vmatpush1.bf16.msra.mxu1 %v2241_v14 }
 0x84c   :  { %v1445_v60 = vpop.permute.xlu1 %1444  ;;  %v1443_v61 = vpop.permute.xlu0 %1442  ;;  %v2233_v57 = vpack.c.bf16 %v1482_v58, %v1478_v6 }
 0x84d   :  { %v1452_v13 = vsel %vm1448_vm10, %v1439_v52, %v1443_v61  ;;  %v1449_v56 = vsel %vm1448_vm10, %v1441_v43, %v1445_v60  ;;  %v1455_v62 = vsel %vm1448_vm10, %v1445_v60, %v1433_v32 }
 0x84e   :  { %v1483_v0 = vmul.f32 %v1465_v53, %v1452_v13  ;;  %v1480_v10 = vmul.f32 %v1469_v48, %v1449_v56  ;;  %v1481_v15 = vmul.f32 %v1473_v54, %v1455_v62 }
 0x850   :  { %v1447_v14 = vpop.permute.xlu0 %1446  ;;  %v2231_v50 = vpack.c.bf16 %v1483_v0, %v1479_v11 }
 0x851   :  { %v1450_v63 = vsel %vm1448_vm10, %v1443_v61, %v1447_v14  ;;  %v1456_v7 = vsel %vm1448_vm10, %v1447_v14, %v1435_v28 }
 0x852   :  { %v1484_v2 = vmul.f32 %v1469_v48, %v1450_v63  ;;  %v1485_v8 = vmul.f32 %v1473_v54, %v1456_v7  ;;  %2232 = vmatprep.subr.bf16.mxu0 %v2231_v50 }
 0x853   :  { %2234 = vmatpush1.bf16.msra.mxu0 %v2233_v57 }
 0x854   :  { %v2245_v18 = vpack.c.bf16 %v1484_v2, %v1480_v10  ;;  %v2243_v1 = vpack.c.bf16 %v1485_v8, %v1481_v15 }
 0x856   :  { %2112 = vmatmul.mubr.msk.f32.vlgmr.msra.gmra.mrb[16].mxu0 %vm149_vm2, %v2105_v17  ;;  %2244 = vmatprep.subr.bf16.mxu1 %v2243_v1 }
 0x857   :  { %2246 = vmatpush1.bf16.msra.mxu1 %v2245_v18  ;;  %1562 = vmatprep.mubr.f32.mxu0 %v2289_v12 }
 0x85a   :  { %2113 = vmatmul.mubr.msk.f32.gmra.mrb[18].mxu0 %vm149_vm2, %v2106_v3  ;;  %2114 = vmatmul.mubr.msk.f32.vlgmr.msra.gmra.mrb[16].mxu1 %vm149_vm2, %v2105_v17 }
 0x85b   :  { %1639 = vmatprep.mubr.f32.mxu1 %v2289_v12  ;;  %1890 = vmatprep.mubr.f32.mxu0 %v2289_v12 }
 0x85d   :  { %v1649_v9 = vpop.permute.xlu1 %1648 }
 0x85e   :  { %2115 = vmatmul.mubr.msk.f32.gmra.mrb[18].mxu1 %vm149_vm2, %v2106_v3 }
 0x85f   :  { %1967 = vmatprep.mubr.f32.mxu1 %v2289_v12 }
 0x861   :  { %v1654_v22 = vpop.permute.xlu0 %1653  ;;  %v1667_v19 = vpop.permute.xlu1 %1666 }
 0x865   :  { %v1672_v46 = vpop.permute.xlu0 %1671 }
 0x929   :  { %v1558_v23 = vpop.f32.mrb[16].mxu0 }
 0x92a   :  { %v1656_v26 = vmul.f32 %v1649_v9, %v1558_v23  ;;  %v1560_v4 = vpop.f32.mrb[17].mxu0 }
 0x92b   :  { %v1657_v32 = vmul.f32 %v1649_v9, %v1560_v4 }
 0x92c   :  { %v1674_v31 = vadd.f32 %v1667_v19, %v1656_v26 }
 0x92d   :  { %v1564_v35 = vpop.f32.mrb[18].mxu0  ;;  %v1635_v30 = vpop.f32.mrb[16].mxu1  ;;  %v1675_v40 = vadd.f32 %v1667_v19, %v1657_v32 }
 0x92e   :  { %v1682_v39 = vmax.f32 %v1674_v31, 0.0  ;;  %v1660_v16 = vmul.f32 %v1654_v22, %v1564_v35  ;;  %v1658_v5 = vmul.f32 %v1649_v9, %v1635_v30  ;;  %v1566_v24 = vpop.f32.mrb[19].mxu0  ;;  %v1637_v44 = vpop.f32.mrb[17].mxu1 }
 0x92f   :  { %v1661_v28 = vmul.f32 %v1654_v22, %v1566_v24  ;;  %v1659_v43 = vmul.f32 %v1649_v9, %v1637_v44  ;;  %v1683_v45 = vmax.f32 %v1675_v40, 0.0  ;;  %v2121_v24 = vld [vmem:[%s3390_s3 + $0x58] sm:$0xff] }
 0x930   :  { %v1678_v27 = vadd.f32 %v1672_v46, %v1660_v16  ;;  %v1676_v36 = vadd.f32 %v1667_v19, %v1658_v5  ;;  %1690 = vrot.lane.b32.xlu1 %v1682_v39, %s2298_s26  ;;  %v2120_v16 = vld [vmem:[%s3390_s3 + $0x50] sm:$0xff]  ;;  %v2119_v5 = vld [vmem:[%s3389_s2 + $0x58] sm:$0xff] }
 0x931   :  { %v1641_v37 = vpop.f32.mrb[18].mxu1  ;;  %v1679_v51 = vadd.f32 %v1672_v46, %v1661_v28  ;;  %v1677_v59 = vadd.f32 %v1667_v19, %v1659_v43 }
 0x932   :  { %v1686_v47 = vmax.f32 %v1678_v27, 0.0  ;;  %v1684_v49 = vmax.f32 %v1676_v36, 0.0  ;;  %v1662_v52 = vmul.f32 %v1654_v22, %v1641_v37  ;;  %v1643_v53 = vpop.f32.mrb[19].mxu1 }
 0x933   :  { %v1663_v61 = vmul.f32 %v1654_v22, %v1643_v53  ;;  %v1687_v58 = vmax.f32 %v1679_v51, 0.0  ;;  %v1685_v13 = vmax.f32 %v1677_v59, 0.0 }
 0x934   :  { %v1680_v55 = vadd.f32 %v1672_v46, %v1662_v52  ;;  %1698 = vrot.lane.b32.xlu1 %v1684_v49, %s2298_s26  ;;  %1692 = vrot.lane.b32.xlu0 %v1686_v47, %s2298_s26 }
 0x935   :  { %v1681_v11 = vadd.f32 %v1672_v46, %v1663_v61 }
 0x936   :  { %v1688_v60 = vmax.f32 %v1680_v55, 0.0 }
 0x937   :  { %v1689_v48 = vmax.f32 %v1681_v11, 0.0 }
 0x938   :  { %1694 = vrot.lane.b32.xlu1 %v1683_v45, %s2298_s26  ;;  %1700 = vrot.lane.b32.xlu0 %v1688_v60, %s2298_s26 }
 0x93c   :  { %1702 = vrot.lane.b32.xlu1 %v1685_v13, %s2298_s26  ;;  %1696 = vrot.lane.b32.xlu0 %v1687_v58, %s2298_s26 }
 0x940   :  { %1704 = vrot.lane.b32.xlu0 %v1689_v48, %s2298_s26 }
 0x9a2   :  { %v1691_v54 = vpop.permute.xlu1 %1690 }
 0x9a6   :  { %v1699_v0 = vpop.permute.xlu1 %1698  ;;  %v1693_v6 = vpop.permute.xlu0 %1692 }
 0x9aa   :  { %v1695_v56 = vpop.permute.xlu1 %1694  ;;  %v1701_v62 = vpop.permute.xlu0 %1700 }
 0x9ab   :  { %v1710_v14 = vsel %vm1448_vm10, %v1691_v54, %v1695_v56  ;;  %v1708_v57 = vsel %vm1448_vm10, %v1695_v56, %v1699_v0 }
 0x9ac   :  { %v3188_v50 = vmax.f32 %v1682_v39, %v1710_v14  ;;  %v3198_v2 = vmax.f32 %v1683_v45, %v1708_v57  ;;  %v2118_v39 = vld [vmem:[%s3389_s2 + $0x50] sm:$0xff] }
 0x9ae   :  { %1733 = vrot.lane.b32.xlu1 %v3188_v50, %s2299_s16  ;;  %v1703_v63 = vpop.permute.xlu1 %1702  ;;  %v1697_v7 = vpop.permute.xlu0 %1696 }
 0x9af   :  { %v1709_v10 = vsel %vm1448_vm10, %v1697_v7, %v1701_v62  ;;  %v1711_v15 = vsel %vm1448_vm10, %v1693_v6, %v1697_v7  ;;  %v1706_v18 = vsel %vm1448_vm10, %v1699_v0, %v1703_v63  ;;  %v1712_v1 = vsel %vm1448_vm10, %v1703_v63, %v1691_v54 }
 0x9b0   :  { %v3200_v8 = vmax.f32 %v1686_v47, %v1711_v15  ;;  %v3202_v17 = vmax.f32 %v1687_v58, %v1709_v10  ;;  %v3220_v4 = vmax.f32 %v1684_v49, %v1706_v18  ;;  %v3222_v19 = vmax.f32 %v1685_v13, %v1712_v1 }
 0x9b2   :  { %v2253_v3 = vpack.c.bf16 %v3200_v8, %v3188_v50  ;;  %1737 = vrot.lane.b32.xlu1 %v3198_v2, %s2299_s16  ;;  %1735 = vrot.lane.b32.xlu0 %v3200_v8, %s2299_s16  ;;  %v1705_v9 = vpop.permute.xlu0 %1704  ;;  %v2251_v22 = vpack.c.bf16 %v3202_v17, %v3198_v2 }
 0x9b3   :  { %v1707_v23 = vsel %vm1448_vm10, %v1701_v62, %v1705_v9  ;;  %v1713_v26 = vsel %vm1448_vm10, %v1705_v9, %v1693_v6 }
 0x9b4   :  { %v3224_v31 = vmax.f32 %v1688_v60, %v1707_v23  ;;  %v3226_v32 = vmax.f32 %v1689_v48, %v1713_v26 }
 0x9b6   :  { %v2265_v35 = vpack.c.bf16 %v3224_v31, %v3220_v4  ;;  %1741 = vrot.lane.b32.xlu1 %v3220_v4, %s2299_s16  ;;  %1739 = vrot.lane.b32.xlu0 %v3202_v17, %s2299_s16  ;;  %v2263_v30 = vpack.c.bf16 %v3226_v32, %v3222_v19 }
 0x9ba   :  { %1745 = vrot.lane.b32.xlu1 %v3222_v19, %s2299_s16  ;;  %1743 = vrot.lane.b32.xlu0 %v3224_v31, %s2299_s16 }
 0x9be   :  { %1766 = vrot.lane.b32.xlu1 %v3188_v50, %s2300_s17  ;;  %1747 = vrot.lane.b32.xlu0 %v3226_v32, %s2299_s16 }
 0x9c2   :  { %1770 = vrot.lane.b32.xlu1 %v3198_v2, %s2300_s17  ;;  %1768 = vrot.lane.b32.xlu0 %v3200_v8, %s2300_s17 }
 0x9c6   :  { %1774 = vrot.lane.b32.xlu1 %v3220_v4, %s2300_s17  ;;  %1772 = vrot.lane.b32.xlu0 %v3202_v17, %s2300_s17 }
 0x9ca   :  { %1778 = vrot.lane.b32.xlu1 %v3222_v19, %s2300_s17  ;;  %1776 = vrot.lane.b32.xlu0 %v3224_v31, %s2300_s17 }
 0x9ce   :  { %1982 = vperm.xlu1 %2286, %v2118_v39   ;;  %1780 = vrot.lane.b32.xlu0 %v3226_v32, %s2300_s17 }
 0x9d2   :  { %2000 = vperm.xlu1 %2286, %v2120_v16   ;;  %1987 = vperm.xlu0 %2285, %v2119_v5   ;;  %v2116_v16 = vld [vmem:[%s3393_s1 + $0x50] sm:$0xff] }
 0x9d6   :  { %2005 = vperm.xlu0 %2285, %v2121_v24  }
 0xa20   :  { %v1734_v44 = vpop.permute.xlu1 %1733 }
 0xa24   :  { %v1738_v46 = vpop.permute.xlu1 %1737  ;;  %v1736_v27 = vpop.permute.xlu0 %1735 }
 0xa25   :  { %v1754_v36 = vsel %vm1749_vm11, %v1734_v44, %v1738_v46 }
 0xa26   :  { %v1759_v47 = vmul.f32 %v1754_v36, %v2431_v25 }
 0xa28   :  { %v1742_v40 = vpop.permute.xlu1 %1741  ;;  %v1740_v28 = vpop.permute.xlu0 %1739 }
 0xa29   :  { %v1755_v37 = vsel %vm1749_vm11, %v1736_v27, %v1740_v28  ;;  %v1752_v59 = vsel %vm1749_vm11, %v1738_v46, %v1742_v40 }
 0xa2a   :  { %v1763_v49 = vmul.f32 %v1755_v37, %v2431_v25  ;;  %v1760_v6 = vmul.f32 %v1752_v59, %v2446_v38 }
 0xa2c   :  { %v1746_v43 = vpop.permute.xlu1 %1745  ;;  %v1744_v52 = vpop.permute.xlu0 %1743  ;;  %v2247_v53 = vpack.c.bf16 %v1763_v49, %v1759_v47 }
 0xa2d   :  { %v1753_v55 = vsel %vm1749_vm11, %v1740_v28, %v1744_v52  ;;  %v1750_v45 = vsel %vm1749_vm11, %v1742_v40, %v1746_v43  ;;  %v1756_v51 = vsel %vm1749_vm11, %v1746_v43, %v1734_v44  ;;  %v2117_v44 = vld [vmem:[%s3393_s1 + $0x58] sm:$0xff] }
 0xa2e   :  { %2248 = vmatprep.subr.bf16.mxu0 %v2247_v53  ;;  %v1764_v25 = vmul.f32 %v1753_v55, %v2446_v38  ;;  %v1758_v11 = vmul.f32 %v1756_v51, %v2453_v41  ;;  %v1761_v48 = vmul.f32 %v1750_v45, %v2456_v42 }
 0xa30   :  { %v1767_v60 = vpop.permute.xlu1 %1766  ;;  %v1748_v61 = vpop.permute.xlu0 %1747  ;;  %v2261_v63 = vpack.c.bf16 %v1764_v25, %v1760_v6 }
 0xa31   :  { %v1751_v58 = vsel %vm1749_vm11, %v1744_v52, %v1748_v61  ;;  %v1757_v13 = vsel %vm1749_vm11, %v1748_v61, %v1736_v27 }
 0xa32   :  { %v1762_v54 = vmul.f32 %v1757_v13, %v2453_v41  ;;  %v1765_v0 = vmul.f32 %v1751_v58, %v2456_v42  ;;  %v2122_v41 = vld [vmem:[%s3392_s5 + $0x14] sm:$0xf] }
 0xa33   :  { %v1799_v38 = vrot.slane %v2122_v41, %v2424_v21  ;;  %v1795_v15 = vrot.slane %v2122_v41, %v2441_v33  ;;  %v1803_v8 = vrot.slane %v2122_v41, %v2435_v29  ;;  %v1807_v33 = vrot.slane %v2122_v41, %v2443_v34 }
 0xa34   :  { %v2249_v56 = vpack.c.bf16 %v1762_v54, %v1758_v11  ;;  %v1771_v62 = vpop.permute.xlu1 %1770  ;;  %v1769_v14 = vpop.permute.xlu0 %1768  ;;  %v2259_v57 = vpack.c.bf16 %v1765_v0, %v1761_v48 }
 0xa35   :  { %v1787_v17 = vsel %vm1782_vm12, %v1767_v60, %v1771_v62 }
 0xa36   :  { %2250 = vmatpush1.bf16.msra.mxu0 %v2249_v56  ;;  %2260 = vmatprep.subr.bf16.mxu1 %v2259_v57 }
 0xa37   :  { %2252 = vmatprep.subr.bf16.mxu0 %v2251_v22  ;;  %2262 = vmatpush1.bf16.msra.mxu1 %v2261_v63  ;;  %v1812_v22 = vmul.f32 %v1795_v15, %v1787_v17 }
 0xa38   :  { %v1775_v7 = vpop.permute.xlu1 %1774  ;;  %2264 = vmatprep.subr.bf16.mxu1 %v2263_v30  ;;  %v1773_v42 = vpop.permute.xlu0 %1772 }
 0xa39   :  { %v1788_v10 = vsel %vm1782_vm12, %v1769_v14, %v1773_v42  ;;  %v1785_v2 = vsel %vm1782_vm12, %v1771_v62, %v1775_v7 }
 0xa3a   :  { %2254 = vmatpush1.bf16.msra.mxu0 %v2253_v3  ;;  %v1816_v1 = vmul.f32 %v1795_v15, %v1788_v10  ;;  %v1813_v50 = vmul.f32 %v1799_v38, %v1785_v2 }
 0xa3b   :  { %2266 = vmatpush1.bf16.msra.mxu1 %v2265_v35 }
 0xa3c   :  { %v1779_v21 = vpop.permute.xlu1 %1778  ;;  %v1777_v18 = vpop.permute.xlu0 %1776  ;;  %v2257_v31 = vpack.c.bf16 %v1816_v1, %v1812_v22 }
 0xa3d   :  { %v1786_v9 = vsel %vm1782_vm12, %v1773_v42, %v1777_v18  ;;  %v1783_v23 = vsel %vm1782_vm12, %v1775_v7, %v1779_v21  ;;  %v1789_v26 = vsel %vm1782_vm12, %v1779_v21, %v1767_v60 }
 0xa3e   :  { %v1817_v3 = vmul.f32 %v1799_v38, %v1786_v9  ;;  %v1814_v29 = vmul.f32 %v1803_v8, %v1783_v23  ;;  %v1815_v30 = vmul.f32 %v1807_v33, %v1789_v26 }
 0xa40   :  { %v1781_v4 = vpop.permute.xlu0 %1780  ;;  %v2255_v19 = vpack.c.bf16 %v1817_v3, %v1813_v50 }
 0xa41   :  { %v1784_v32 = vsel %vm1782_vm12, %v1777_v18, %v1781_v4  ;;  %v1790_v35 = vsel %vm1782_vm12, %v1781_v4, %v1769_v14 }
 0xa42   :  { %v1818_v34 = vmul.f32 %v1803_v8, %v1784_v32  ;;  %v1819_v39 = vmul.f32 %v1807_v33, %v1790_v35  ;;  %2256 = vmatprep.subr.bf16.mxu0 %v2255_v19 }
 0xa43   :  { %2258 = vmatpush1.bf16.msra.mxu0 %v2257_v31 }
 0xa44   :  { %v2269_v5 = vpack.c.bf16 %v1818_v34, %v1814_v29  ;;  %v2267_v24 = vpack.c.bf16 %v1819_v39, %v1815_v30 }
 0xa46   :  { %2123 = vmatmul.mubr.msk.f32.vlgmr.msra.gmra.mrb[20].mxu0 %vm149_vm2, %v2116_v16  ;;  %2268 = vmatprep.subr.bf16.mxu1 %v2267_v24 }
 0xa47   :  { %2270 = vmatpush1.bf16.msra.mxu1 %v2269_v5  ;;  %1896 = vmatprep.mubr.f32.mxu0 %v2289_v12 }
 0xa4a   :  { %2124 = vmatmul.mubr.msk.f32.gmra.mrb[22].mxu0 %vm149_vm2, %v2117_v44  ;;  %2125 = vmatmul.mubr.msk.f32.vlgmr.msra.gmra.mrb[20].mxu1 %vm149_vm2, %v2116_v16 }
 0xa4b   :  { %1973 = vmatprep.mubr.f32.mxu1 %v2289_v12 }
 0xa4d   :  { %v1983_v46 = vpop.permute.xlu1 %1982 }
 0xa4e   :  { %2126 = vmatmul.mubr.msk.f32.gmra.mrb[22].mxu1 %vm149_vm2, %v2117_v44 }
 0xa51   :  { %v1988_v27 = vpop.permute.xlu0 %1987  ;;  %v2001_v37 = vpop.permute.xlu1 %2000 }
 0xa55   :  { %v2006_v60 = vpop.permute.xlu0 %2005 }
 0xb19   :  { %v1892_v36 = vpop.f32.mrb[20].mxu0 }
 0xb1a   :  { %v1990_v40 = vmul.f32 %v1983_v46, %v1892_v36  ;;  %v1894_v28 = vpop.f32.mrb[21].mxu0 }
 0xb1b   :  { %v1991_v49 = vmul.f32 %v1983_v46, %v1894_v28 }
 0xb1c   :  { %v2008_v47 = vadd.f32 %v2001_v37, %v1990_v40 }
 0xb1d   :  { %v1898_v43 = vpop.f32.mrb[22].mxu0  ;;  %v1969_v52 = vpop.f32.mrb[20].mxu1  ;;  %v2009_v25 = vadd.f32 %v2001_v37, %v1991_v49 }
 0xb1e   :  { %v2016_v53 = vmax.f32 %v2008_v47, 0.0  ;;  %v1994_v55 = vmul.f32 %v1988_v27, %v1898_v43  ;;  %v1992_v45 = vmul.f32 %v1983_v46, %v1969_v52  ;;  %v1900_v51 = vpop.f32.mrb[23].mxu0  ;;  %v1971_v59 = vpop.f32.mrb[21].mxu1 }
 0xb1f   :  { %v1995_v58 = vmul.f32 %v1988_v27, %v1900_v51  ;;  %v1993_v54 = vmul.f32 %v1983_v46, %v1971_v59  ;;  %v2017_v62 = vmax.f32 %v2009_v25, 0.0 }
 0xb20   :  { %v2012_v61 = vadd.f32 %v2006_v60, %v1994_v55  ;;  %v2010_v12 = vadd.f32 %v2001_v37, %v1992_v45  ;;  %2024 = vrot.lane.b32.xlu1 %v2016_v53, %s2300_s17 }
 0xb21   :  { %v1975_v13 = vpop.f32.mrb[22].mxu1  ;;  %v2013_v14 = vadd.f32 %v2006_v60, %v1995_v58  ;;  %v2011_v57 = vadd.f32 %v2001_v37, %v1993_v54 }
 0xb22   :  { %v2020_v11 = vmax.f32 %v2012_v61, 0.0  ;;  %v2018_v48 = vmax.f32 %v2010_v12, 0.0  ;;  %v1996_v0 = vmul.f32 %v1988_v27, %v1975_v13  ;;  %v1977_v6 = vpop.f32.mrb[23].mxu1 }
 0xb23   :  { %v1997_v41 = vmul.f32 %v1988_v27, %v1977_v6  ;;  %v2021_v7 = vmax.f32 %v2013_v14, 0.0  ;;  %v2019_v42 = vmax.f32 %v2011_v57, 0.0 }
 0xb24   :  { %v2014_v56 = vadd.f32 %v2006_v60, %v1996_v0  ;;  %2032 = vrot.lane.b32.xlu1 %v2018_v48, %s2300_s17  ;;  %2026 = vrot.lane.b32.xlu0 %v2020_v11, %s2300_s17 }
 0xb25   :  { %v2015_v38 = vadd.f32 %v2006_v60, %v1997_v41 }
 0xb26   :  { %v2022_v63 = vmax.f32 %v2014_v56, 0.0 }
 0xb27   :  { %v2023_v10 = vmax.f32 %v2015_v38, 0.0 }
 0xb28   :  { %2028 = vrot.lane.b32.xlu1 %v2017_v62, %s2300_s17  ;;  %2034 = vrot.lane.b32.xlu0 %v2022_v63, %s2300_s17 }
 0xb2c   :  { %2036 = vrot.lane.b32.xlu1 %v2019_v42, %s2300_s17  ;;  %2030 = vrot.lane.b32.xlu0 %v2021_v7, %s2300_s17 }
 0xb30   :  { %2038 = vrot.lane.b32.xlu0 %v2023_v10, %s2300_s17 }
 0xb92   :  { %v2025_v15 = vpop.permute.xlu1 %2024 }
 0xb96   :  { %v2033_v2 = vpop.permute.xlu1 %2032  ;;  %v2027_v17 = vpop.permute.xlu0 %2026 }
 0xb9a   :  { %v2029_v21 = vpop.permute.xlu1 %2028  ;;  %v2035_v18 = vpop.permute.xlu0 %2034 }
 0xb9b   :  { %v2042_v1 = vsel %vm1782_vm12, %v2029_v21, %v2033_v2  ;;  %v2044_v9 = vsel %vm1782_vm12, %v2025_v15, %v2029_v21 }
 0xb9c   :  { %v2048_v50 = vmax.f32 %v2016_v53, %v2044_v9  ;;  %v2049_v8 = vmax.f32 %v2017_v62, %v2042_v1 }
 0xb9e   :  { %2056 = vst [vmem:[%s3394_s6] sm:$0xff] %v2048_v50  ;;  %2057 = vst [vmem:[%s3394_s6 + $0x8] sm:$0xff] %v2049_v8  ;;  %v2037_v33 = vpop.permute.xlu1 %2036  ;;  %v2031_v3 = vpop.permute.xlu0 %2030 }
 0xb9f   :  { %v2040_v22 = vsel %vm1782_vm12, %v2033_v2, %v2037_v33  ;;  %v2046_v23 = vsel %vm1782_vm12, %v2037_v33, %v2025_v15  ;;  %v2043_v26 = vsel %vm1782_vm12, %v2031_v3, %v2035_v18  ;;  %v2045_v4 = vsel %vm1782_vm12, %v2027_v17, %v2031_v3 }
 0xba0   :  { %v2050_v19 = vmax.f32 %v2018_v48, %v2040_v22  ;;  %v2051_v31 = vmax.f32 %v2019_v42, %v2046_v23  ;;  %v2052_v32 = vmax.f32 %v2020_v11, %v2045_v4  ;;  %v2053_v35 = vmax.f32 %v2021_v7, %v2043_v26 }
 0xba2   :  { %2058 = vst [vmem:[%s3394_s6 + $0x10] sm:$0xff] %v2050_v19  ;;  %2059 = vst [vmem:[%s3394_s6 + $0x18] sm:$0xff] %v2051_v31  ;;  %v2039_v29 = vpop.permute.xlu0 %2038 }
 0xba3   :  { %2060 = vst [vmem:[%s3394_s6 + $0x20] sm:$0xff] %v2052_v32  ;;  %2061 = vst [vmem:[%s3394_s6 + $0x28] sm:$0xff] %v2053_v35  ;;  %v2041_v30 = vsel %vm1782_vm12, %v2035_v18, %v2039_v29  ;;  %v2047_v34 = vsel %vm1782_vm12, %v2039_v29, %v2027_v17 }
 0xba4   :  { %v2054_v39 = vmax.f32 %v2022_v63, %v2041_v30  ;;  %v2055_v16 = vmax.f32 %v2023_v10, %v2047_v34 }
 0xba6   :  { %2062 = vst [vmem:[%s3394_s6 + $0x30] sm:$0xff] %v2054_v39  ;;  %2063 = vst [vmem:[%s3394_s6 + $0x38] sm:$0xff] %v2055_v16 }

</bundles_post_ra>
